<compile_context>
chip_gen: v7x
topology: tpu7x:2x2x1
jax: 0.10.0
libtpu: 0.0.40
codegen_flags: <defaults>
</compile_context>

<pallas_src>
import math
from functools import partial

import numpy as np
import jax
import jax.numpy as jnp
from jax import lax
from jax.experimental import pallas as pl
from jax.experimental.pallas import tpu as pltpu

MMT = jnp.bfloat16  # MXU operand dtype (f32 accumulation via preferred_element_type)
# TODO(synk): activations still live in f32 in HBM; full bf16 activation streaming would
#             further halve HBM traffic on the memory-bound 1x1-conv matmuls.


def _round_up(x, m):
    return ((x + m - 1) // m) * m


def _tile_rows(M):
    # Large, lane-dense row tiles; ragged last block handled by the pipeline.
    return 512 if M >= 512 else max(8, _round_up(M, 8))


def _silu(x):
    return x / (1.0 + jnp.exp(-x))


# ----------------------------------------------------------------------------------
# Row-tiled fused matmul kernels (flat (rows, C) operands, weights broadcast, bf16 W)
# ----------------------------------------------------------------------------------
def _mm_kernel(x_ref, w_ref, o_ref):
    o_ref[...] = jnp.dot(x_ref[...].astype(MMT), w_ref[...],
                         preferred_element_type=jnp.float32).astype(o_ref.dtype)


def _ln_mm_kernel(x_ref, g_ref, b_ref, w_ref, o_ref):
    # WithBias LayerNorm prologue fused into the projection matmul.
    x = x_ref[...].astype(jnp.float32)
    mu = jnp.mean(x, axis=-1, keepdims=True)
    var = jnp.mean(jnp.square(x - mu), axis=-1, keepdims=True)
    y = (x - mu) * lax.rsqrt(var + 1e-5) * g_ref[...] + b_ref[...]
    o_ref[...] = jnp.dot(y.astype(MMT), w_ref[...],
                         preferred_element_type=jnp.float32).astype(o_ref.dtype)


def _mm_add_kernel(x_ref, w_ref, r_ref, o_ref):
    y = jnp.dot(x_ref[...].astype(MMT), w_ref[...],
                preferred_element_type=jnp.float32)
    o_ref[...] = (y + r_ref[...]).astype(o_ref.dtype)


def _mm2_kernel(a_ref, wa_ref, b_ref, wb_ref, o_ref):
    # concat([a, b], -1) @ W == a @ Wa + b @ Wb  (avoids materializing the concat)
    y = jnp.dot(a_ref[...].astype(MMT), wa_ref[...], preferred_element_type=jnp.float32)
    y = y + jnp.dot(b_ref[...].astype(MMT), wb_ref[...], preferred_element_type=jnp.float32)
    o_ref[...] = y.astype(o_ref.dtype)


def _gate_mm_add_kernel(x1_ref, x2_ref, w_ref, r_ref, o_ref):
    # (silu(x1) * x2) @ W + residual
    g = _silu(x1_ref[...]) * x2_ref[...]
    y = jnp.dot(g.astype(MMT), w_ref[...], preferred_element_type=jnp.float32)
    o_ref[...] = (y + r_ref[...]).astype(o_ref.dtype)


def _mm_softplus_kernel(x_ref, w_ref, b_ref, o_ref):
    y = jnp.dot(x_ref[...].astype(MMT), w_ref[...],
                preferred_element_type=jnp.float32) + b_ref[...]
    # stable softplus
    o_ref[...] = (jnp.maximum(y, 0.0) + jnp.log(1.0 + jnp.exp(-jnp.abs(y)))).astype(o_ref.dtype)


def _row_spec(tm, shape):
    return pl.BlockSpec((tm, shape[1]), lambda i: (i, 0))


def _bcast_spec(shape):
    nd = len(shape)
    return pl.BlockSpec(shape, lambda i: (0,) * nd)


def _row_call(kernel, arrays, row_flags, n_out):
    M = next(a.shape[0] for a, r in zip(arrays, row_flags) if r)
    tm = _tile_rows(M)
    in_specs = [_row_spec(tm, a.shape) if r else _bcast_spec(a.shape)
                for a, r in zip(arrays, row_flags)]
    return pl.pallas_call(
        kernel,
        out_shape=jax.ShapeDtypeStruct((M, n_out), jnp.float32),
        grid=(pl.cdiv(M, tm),),
        in_specs=in_specs,
        out_specs=pl.BlockSpec((tm, n_out), lambda i: (i, 0)),
        compiler_params=pltpu.CompilerParams(dimension_semantics=("parallel",)),
    )(*arrays)


@jax.jit
def matmul_flat(x, w):
    return _row_call(_mm_kernel, [x, w], [True, False], w.shape[1])


@jax.jit
def ln_matmul_flat(x, g, b, w):
    return _row_call(_ln_mm_kernel, [x, g.reshape(1, -1), b.reshape(1, -1), w],
                     [True, False, False, False], w.shape[1])


@jax.jit
def matmul_add_flat(x, w, r):
    return _row_call(_mm_add_kernel, [x, w, r], [True, False, True], w.shape[1])


@jax.jit
def matmul2_flat(a, b, wa, wb):
    return _row_call(_mm2_kernel, [a, wa, b, wb], [True, False, True, False], wa.shape[1])


@jax.jit
def gate_matmul_add_flat(x1, x2, w, r):
    return _row_call(_gate_mm_add_kernel, [x1, x2, w, r],
                     [True, True, False, True], w.shape[1])


@jax.jit
def matmul_bias_softplus_flat(x, w, b):
    return _row_call(_mm_softplus_kernel, [x, w, b.reshape(1, -1)],
                     [True, False, False], w.shape[1])


# ----------------------------------------------------------------------------------
# Depthwise 3x3 conv (dilation 1 / 2) and dense 3x3 conv (in-kernel taps, no HBM im2col)
# ----------------------------------------------------------------------------------
# TODO(synk): both conv kernels process one whole padded image per grid step; for large
# resolutions they should be spatially tiled into row bands with halos (fits v7x's
# 64 MiB VMEM and exposes grid steps for double-buffering / both TensorCores).
def _dwconv_kernel(x_ref, w_ref, o_ref, *, d):
    H, W, C = o_ref.shape
    x = x_ref[...]
    w = w_ref[...]
    acc = jnp.zeros((H, W, C), jnp.float32)
    for ky in range(3):
        for kx in range(3):
            acc = acc + (x[ky * d:ky * d + H, kx * d:kx * d + W, :].astype(jnp.float32)
                         * w[ky:ky + 1, kx:kx + 1, :])
    o_ref[...] = acc.astype(o_ref.dtype)


@partial(jax.jit, static_argnames=("dilation",))
def pallas_dwconv3x3(x, w, dilation=1):
    """x: (B, H, W, C) NHWC, w: (3, 3, C). stride 1, pad = dilation."""
    B, H, W, C = x.shape
    d = dilation
    xp = jnp.pad(x, ((0, 0), (d, d), (d, d), (0, 0)))
    return pl.pallas_call(
        partial(_dwconv_kernel, d=d),
        out_shape=jax.ShapeDtypeStruct((B, H, W, C), jnp.float32),
        grid=(B,),
        in_specs=[pl.BlockSpec((None, H + 2 * d, W + 2 * d, C), lambda b: (b, 0, 0, 0)),
                  pl.BlockSpec((3, 3, C), lambda b: (0, 0, 0))],
        out_specs=pl.BlockSpec((None, H, W, C), lambda b: (b, 0, 0, 0)),
        compiler_params=pltpu.CompilerParams(dimension_semantics=("parallel",)),
    )(xp, w)


def _conv3x3_kernel(x_ref, w_ref, o_ref):
    # 9 image-sized matmuls: M = H*W, K = Cin, accumulated in f32; one full-block store.
    H, W, Cout = o_ref.shape
    Cin = x_ref.shape[-1]
    acc = jnp.zeros((H * W, Cout), jnp.float32)
    for ky in range(3):
        for kx in range(3):
            patch = x_ref[ky:ky + H, kx:kx + W, :]
            acc = acc + jnp.dot(patch.reshape(H * W, Cin).astype(MMT), w_ref[ky, kx],
                                preferred_element_type=jnp.float32)
    o_ref[...] = acc.reshape(H, W, Cout).astype(o_ref.dtype)


@jax.jit
def pallas_conv3x3(x, w):
    """Dense 3x3 conv, stride 1, pad 1, no bias.  x: (B,H,W,Cin), w: (3,3,Cin,Cout) bf16."""
    B, H, W, Cin = x.shape
    Cout = w.shape[3]
    xp = jnp.pad(x, ((0, 0), (1, 1), (1, 1), (0, 0)))
    return pl.pallas_call(
        _conv3x3_kernel,
        out_shape=jax.ShapeDtypeStruct((B, H, W, Cout), jnp.float32),
        grid=(B,),
        in_specs=[pl.BlockSpec((None, H + 2, W + 2, Cin), lambda b: (b, 0, 0, 0)),
                  pl.BlockSpec((3, 3, Cin, Cout), lambda b: (0, 0, 0, 0))],
        out_specs=pl.BlockSpec((None, H, W, Cout), lambda b: (b, 0, 0, 0)),
        compiler_params=pltpu.CompilerParams(dimension_semantics=("parallel",)),
    )(xp, w)


# ----------------------------------------------------------------------------------
# FFT-domain attention core: (1) Gram accumulation over L tiles + stabilized softmax_1,
# (2) attn @ v streamed per L tile.  q/k/v streamed as bf16; accumulation in f32.
# ----------------------------------------------------------------------------------
def _attn_gram_kernel(q_ref, k_ref, t_ref, a_ref, g_sc, sq_sc, sk_sc):
    # program_id / num_programs only at kernel top level (never inside pl.when bodies).
    li = pl.program_id(1)
    n_l = pl.num_programs(1)

    @pl.when(li == 0)
    def _():
        g_sc[...] = jnp.zeros_like(g_sc)
        sq_sc[...] = jnp.zeros_like(sq_sc)
        sk_sc[...] = jnp.zeros_like(sk_sc)

    qb = q_ref[0]                                  # (d, TL) bf16
    kb = k_ref[0]
    q = qb.astype(jnp.float32)
    k = kb.astype(jnp.float32)
    g_sc[...] += lax.dot_general(qb, kb, (((1,), (1,)), ((), ())),
                                 preferred_element_type=jnp.float32)       # (d, d)
    sq_sc[...] += jnp.sum(q * q, axis=1, keepdims=True)                    # (d, 1)
    ones_row = jnp.ones((1, q.shape[1]), jnp.float32)
    sk_sc[...] += lax.dot_general(ones_row, k * k, (((1,), (1,)), ((), ())),
                                  preferred_element_type=jnp.float32)      # (1, d)

    @pl.when(li == n_l - 1)
    def _():
        t = t_ref[...]                                                     # (1, 1)
        qn = lax.rsqrt(jnp.maximum(sq_sc[...], 1e-24))   # == 1/max(||q||, 1e-12)
        kn = lax.rsqrt(jnp.maximum(sk_sc[...], 1e-24))
        logits = g_sc[...] * qn * kn * t
        m = jnp.maximum(jnp.max(logits, axis=-1, keepdims=True), 0.0)
        e = jnp.exp(logits - m)
        denom = jnp.sum(e, axis=-1, keepdims=True) + jnp.exp(-m)           # softmax_1
        a_ref[0] = e / denom


def _attn_apply_kernel(a_ref, v_ref, o_ref):
    o_ref[0] = jnp.dot(a_ref[0].astype(MMT), v_ref[0],
                       preferred_element_type=jnp.float32).astype(o_ref.dtype)


def _attn_tl(L):
    return L if L <= 512 else 512


@jax.jit
def pallas_attn_gram(q, k, temp):
    """q/k: (B*heads, d, L) bf16; temp: (B*heads, 1, 1) f32."""
    BH, d, L = q.shape
    TL = _attn_tl(L)
    Lp = _round_up(L, TL)
    if Lp != L:
        q = jnp.pad(q, ((0, 0), (0, 0), (0, Lp - L)))
        k = jnp.pad(k, ((0, 0), (0, 0), (0, Lp - L)))
    return pl.pallas_call(
        _attn_gram_kernel,
        out_shape=jax.ShapeDtypeStruct((BH, d, d), jnp.float32),
        grid=(BH, Lp // TL),
        in_specs=[pl.BlockSpec((1, d, TL), lambda i, l: (i, 0, l)),
                  pl.BlockSpec((1, d, TL), lambda i, l: (i, 0, l)),
                  pl.BlockSpec((None, 1, 1), lambda i, l: (i, 0, 0))],
        out_specs=pl.BlockSpec((1, d, d), lambda i, l: (i, 0, 0)),
        scratch_shapes=[pltpu.VMEM((d, d), jnp.float32),
                        pltpu.VMEM((d, 1), jnp.float32),
                        pltpu.VMEM((1, d), jnp.float32)],
        compiler_params=pltpu.CompilerParams(dimension_semantics=("parallel", "arbitrary")),
    )(q, k, temp)


@jax.jit
def pallas_attn_apply(attn, v):
    """attn: (BH, d, d) f32; v: (BH, d, L) bf16."""
    BH, d, L = v.shape
    TL = _attn_tl(L)
    Lp = _round_up(L, TL)
    if Lp != L:
        v = jnp.pad(v, ((0, 0), (0, 0), (0, Lp - L)))
    out = pl.pallas_call(
        _attn_apply_kernel,
        out_shape=jax.ShapeDtypeStruct((BH, d, Lp), jnp.float32),
        grid=(BH, Lp // TL),
        in_specs=[pl.BlockSpec((1, d, d), lambda i, l: (i, 0, 0)),
                  pl.BlockSpec((1, d, TL), lambda i, l: (i, 0, l))],
        out_specs=pl.BlockSpec((1, d, TL), lambda i, l: (i, 0, l)),
        compiler_params=pltpu.CompilerParams(dimension_semantics=("parallel", "parallel")),
    )(attn, v)
    return out[:, :, :L] if Lp != L else out


# ----------------------------------------------------------------------------------
# Mamba kernels: fused causal depthwise conv1d + SiLU + x_proj matmul, and the
# selective-scan recurrence (h resident in VMEM).
# ----------------------------------------------------------------------------------
def _mamba_conv_xproj_kernel(x_ref, w_ref, b_ref, wx_ref, xc_ref, xdbl_ref):
    L, C = xc_ref.shape
    K = w_ref.shape[0]
    acc = jnp.zeros((L, C), jnp.float32)
    for k in range(K):
        acc = acc + x_ref[k:k + L, :].astype(jnp.float32) * w_ref[k:k + 1, :]
    acc = acc + b_ref[...]
    a = _silu(acc)                                           # SiLU fused
    xc_ref[...] = a.astype(xc_ref.dtype)
    xdbl_ref[...] = jnp.dot(a.astype(MMT), wx_ref[...],     # fused x_proj
                            preferred_element_type=jnp.float32).astype(xdbl_ref.dtype)


@jax.jit
def pallas_mamba_conv_xproj(xpad, w, b, wx):
    """xpad: (B, L+K-1, C) causal-padded, w: (K, C), b: (C,), wx: (C, R) bf16."""
    B, Lp, C = xpad.shape
    K = w.shape[0]
    L = Lp - (K - 1)
    R = wx.shape[1]
    return pl.pallas_call(
        _mamba_conv_xproj_kernel,
        out_shape=(jax.ShapeDtypeStruct((B, L, C), jnp.float32),
                   jax.ShapeDtypeStruct((B, L, R), jnp.float32)),
        grid=(B,),
        in_specs=[pl.BlockSpec((None, Lp, C), lambda i: (i, 0, 0)),
                  pl.BlockSpec((K, C), lambda i: (0, 0)),
                  pl.BlockSpec((1, C), lambda i: (0, 0)),
                  pl.BlockSpec((C, R), lambda i: (0, 0))],
        out_specs=(pl.BlockSpec((None, L, C), lambda i: (i, 0, 0)),
                   pl.BlockSpec((None, L, R), lambda i: (i, 0, 0))),
        compiler_params=pltpu.CompilerParams(dimension_semantics=("parallel",)),
    )(xpad, w, b.reshape(1, -1), wx)


def _scan_kernel(delta_ref, u_ref, b_ref, c_ref, at_ref, d_ref, o_ref, h_ref):
    # h (d_state, d_inner) stays resident in VMEM for the whole sequence.
    L = delta_ref.shape[0]
    d_state = at_ref.shape[0]
    h_ref[...] = jnp.zeros_like(h_ref)
    A_T = at_ref[...]                       # (d_state, d_inner)
    Dv = d_ref[...]                         # (1, d_inner)
    eye = jnp.eye(d_state, dtype=jnp.float32)

    def step(t, carry):
        dt = delta_ref[pl.ds(t, 1), :]      # (1, d_inner)
        ut = u_ref[pl.ds(t, 1), :]
        bt = b_ref[pl.ds(t, 1), :]          # (1, d_state)
        ct = c_ref[pl.ds(t, 1), :]
        dA = jnp.exp(A_T * dt)              # (d_state, d_inner)
        bt_col = lax.dot_general(eye, bt, (((1,), (1,)), ((), ())),
                                 preferred_element_type=jnp.float32)        # (d_state, 1)
        dbu = jnp.dot(bt_col, dt * ut, preferred_element_type=jnp.float32)  # (d_state, d_inner)
        h = dA * h_ref[...] + dbu
        h_ref[...] = h
        y = jnp.dot(ct, h, preferred_element_type=jnp.float32)              # (1, d_inner)
        o_ref[pl.ds(t, 1), :] = y + ut * Dv
        return carry

    # TODO(synk): chunk the L axis (grid over L, h carried) and batch y stores into
    #             8-row tiles for long sequences; also split d_inner for megacore.
    lax.fori_loop(0, L, step, 0)


@jax.jit
def pallas_selective_scan(delta, u, Bm, Cm, A_T, Dvec):
    """delta/u: (B, L, d_inner); Bm/Cm: (B, L, d_state); A_T: (d_state, d_inner)."""
    B, L, d_inner = delta.shape
    d_state = Bm.shape[-1]
    return pl.pallas_call(
        _scan_kernel,
        out_shape=jax.ShapeDtypeStruct((B, L, d_inner), jnp.float32),
        grid=(B,),
        in_specs=[pl.BlockSpec((None, L, d_inner), lambda i: (i, 0, 0)),
                  pl.BlockSpec((None, L, d_inner), lambda i: (i, 0, 0)),
                  pl.BlockSpec((None, L, d_state), lambda i: (i, 0, 0)),
                  pl.BlockSpec((None, L, d_state), lambda i: (i, 0, 0)),
                  pl.BlockSpec((d_state, d_inner), lambda i: (0, 0)),
                  pl.BlockSpec((1, d_inner), lambda i: (0, 0))],
        out_specs=pl.BlockSpec((None, L, d_inner), lambda i: (i, 0, 0)),
        scratch_shapes=[pltpu.VMEM((d_state, d_inner), jnp.float32)],
        compiler_params=pltpu.CompilerParams(dimension_semantics=("parallel",)),
    )(delta, u, Bm, Cm, A_T, Dvec.reshape(1, -1))


# ----------------------------------------------------------------------------------
# FFT helpers (plain JAX glue: complex FFTs and the frequency-index permutation)
# ----------------------------------------------------------------------------------
def _pad_w_even(x, factor=2):
    w = x.shape[2]
    pad = 0 if w % factor == 0 else (w // factor + 1) * factor - w
    if pad:
        x = jnp.pad(x, ((0, 0), (0, 0), (0, pad), (0, 0)))
    return x, pad


def _pad_axis1(x, factor):
    n = x.shape[1]
    pad = 0 if n % factor == 0 else (n // factor + 1) * factor - n
    if pad:
        x = jnp.pad(x, ((0, 0), (0, pad), (0, 0)))
    return x, pad


def _get_idx_map(h, w):
    l1_u = np.arange(h // 2).reshape(-1, 1)
    l2 = np.arange(w).reshape(1, -1)
    half_u = l1_u @ l2
    l1_d = np.arange(h - h // 2)[::-1].reshape(-1, 1)
    half_d = l1_d @ l2
    m = np.concatenate([half_u, half_d], 0).reshape(-1)
    return jnp.asarray(np.argsort(m, kind="stable"))


def _fft_branch(x):
    # x: (B, H, W, C)  ->  (B, H*Wr, 2C) permuted by idx
    x, pad_w = _pad_w_even(x)
    xf = jnp.fft.rfft2(x.astype(jnp.float32), axes=(1, 2), norm="ortho")
    xr = jnp.concatenate([xf.real, xf.imag], axis=-1)
    B, h, wr, C2 = xr.shape
    idx = _get_idx_map(h, wr)
    xr = xr.reshape(B, h * wr, C2)
    xr = jnp.take(xr, idx, axis=1)
    return xr, pad_w, idx, h


def _ifft_branch(x, pad_w, idx, h):
    inv = jnp.argsort(idx)
    x = jnp.take(x, inv, axis=1)
    B, HW, C2 = x.shape
    wr = HW // h
    x = x.reshape(B, h, wr, C2)
    xr = x[..., :C2 // 2]
    xi = x[..., C2 // 2:]
    y = jnp.fft.irfft2(xr + 1j * xi, axes=(1, 2), norm="ortho")
    if pad_w:
        y = y[:, :, :y.shape[2] - pad_w, :]
    return y


def attention_core(qkv, ap, num_heads, factor=2):
    """qkv: (B, H, W, 3C) -> (B, H, W, C)."""
    B, H, W, C3 = qkv.shape
    C = C3 // 3
    q = qkv[..., :C]
    k = qkv[..., C:2 * C]
    v = qkv[..., 2 * C:]

    qf, pad_w, idx, h = _fft_branch(q)
    kf, _, _, _ = _fft_branch(k)
    vf, _, _, _ = _fft_branch(v)
    qf, pad = _pad_axis1(qf, factor)
    kf, _ = _pad_axis1(kf, factor)
    vf, _ = _pad_axis1(vf, factor)

    _, HWp, C2 = qf.shape
    c = C2 // num_heads
    hw2 = HWp // factor
    d = c * factor

    def to_heads(t):   # 'b (head c) (factor hw) -> (b head) (c factor) hw'
        t = t.reshape(B, factor, hw2, num_heads, c)
        t = jnp.transpose(t, (0, 3, 4, 1, 2))
        return t.reshape(B * num_heads, d, hw2).astype(MMT)   # bf16 streamed to kernels

    qh, kh, vh = to_heads(qf), to_heads(kf), to_heads(vf)
    temp = jnp.tile(ap["temperature"].reshape(num_heads), (B,)).reshape(B * num_heads, 1, 1)

    attn = pallas_attn_gram(qh, kh, temp)
    oh = pallas_attn_apply(attn, vh)

    o = oh.reshape(B, num_heads, c, factor, hw2)
    o = jnp.transpose(o, (0, 3, 4, 1, 2)).reshape(B, HWp, C2)
    if pad:
        o = o[:, :HWp - pad, :]
    return _ifft_branch(o, pad_w, idx, h)


# ----------------------------------------------------------------------------------
# Mamba branch (mamba_ssm.Mamba semantics: d_state=16, d_conv=4, expand=2)
# ----------------------------------------------------------------------------------
def mamba_branch(x_flat, ln_w, ln_b, mp, B, L, reverse):
    """Returns x + Mamba(LayerNorm(x)) as a flat (B*L, D) tensor."""
    # TODO(synk): reference feeds NCHW straight into mamba_ssm.Mamba(d_model=dim); we
    # interpret it as a (B, H*W, C) sequence; the reverse branch's channel flips are
    # folded into the in/out projection weights (flip(LN(x)) @ W == LN(x) @ W_rowflip).
    w_in = mp["in_proj_w"]
    w_out = mp["out_proj_w"]
    if reverse:
        w_in = w_in[::-1, :]
        w_out = w_out[:, ::-1]
    d_inner = w_in.shape[1] // 2
    d_state = mp["A_log"].shape[1]
    dt_rank = mp["dt_proj_w"].shape[0]

    xz = ln_matmul_flat(x_flat, ln_w, ln_b, w_in).reshape(B, L, 2 * d_inner)
    xm = xz[..., :d_inner]
    z = xz[..., d_inner:].reshape(B * L, d_inner)

    xpad = jnp.pad(xm, ((0, 0), (mp["conv1d_w"].shape[0] - 1, 0), (0, 0)))
    xc, xdbl = pallas_mamba_conv_xproj(xpad, mp["conv1d_w"], mp["conv1d_b"],
                                       mp["x_proj_w"])      # (B,L,d_inner), (B,L,R)

    dt_in = xdbl[..., :dt_rank].reshape(B * L, dt_rank)
    Bm = xdbl[..., dt_rank:dt_rank + d_state]
    Cm = xdbl[..., dt_rank + d_state:]

    delta = matmul_bias_softplus_flat(dt_in, mp["dt_proj_w"],
                                      mp["dt_proj_b"]).reshape(B, L, d_inner)
    A_T = -jnp.exp(mp["A_log"]).T                                         # (d_state, d_inner)
    y = pallas_selective_scan(delta, xc, Bm, Cm, A_T, mp["D"])            # (B, L, d_inner)

    # out_proj with fused SiLU(z)-gate prologue and residual epilogue
    return gate_matmul_add_flat(z, y.reshape(B * L, d_inner), w_out, x_flat)


# ----------------------------------------------------------------------------------
# Blocks
# ----------------------------------------------------------------------------------
def transmamba_block_forward(x, p, heads):
    B, H, W, C = x.shape
    L = H * W
    xf = x.reshape(B * L, C)
    ap, fp = p["attn"], p["ffn"]

    # ---- Transformer branch (pre-LN fused into qkv / project_in matmuls) ----
    qkv = ln_matmul_flat(xf, p["t_norm1_w"], p["t_norm1_b"], ap["qkv_w"])
    qkv = pallas_dwconv3x3(qkv.reshape(B, H, W, 3 * C), ap["qkv_dw_w"], dilation=1)
    att = attention_core(qkv, ap, heads)
    t = matmul_add_flat(att.reshape(B * L, C), ap["proj_w"], xf)          # + residual

    ffn = ln_matmul_flat(t, p["t_norm2_w"], p["t_norm2_b"], fp["in_w"])
    hid2 = ffn.shape[1]
    fm = pallas_dwconv3x3(ffn.reshape(B, H, W, hid2), fp["dw_w"], dilation=2)
    # FFT channel modulation (complex arithmetic stays in XLA)
    fm, pad_w = _pad_w_even(fm)
    ff = jnp.fft.rfft2(fm, axes=(1, 2))
    ff = fp["fft_w"].reshape(1, 1, 1, -1) * ff + fp["fft_b"].reshape(1, 1, 1, -1)
    fm = jnp.fft.irfft2(ff, axes=(1, 2))
    if pad_w:
        fm = fm[:, :, :fm.shape[2] - pad_w, :]
    hid = hid2 // 2
    x1 = fm[..., :hid].reshape(B * L, hid)
    x2 = fm[..., hid:].reshape(B * L, hid)
    t = gate_matmul_add_flat(x1, x2, fp["out_w"], t)                      # + residual

    # ---- Mamba branch ----
    m = mamba_branch(xf, p["m_norm1_w"], p["m_norm1_b"], p["mamba1"], B, L, reverse=False)
    m = mamba_branch(m, p["m_norm2_w"], p["m_norm2_b"], p["mamba2"], B, L, reverse=True)

    # ---- fuse: 1x1 conv over concat([t, m]) without materializing the concat ----
    out = matmul2_flat(t, m, p["fuse_w"][:C], p["fuse_w"][C:])
    return out.reshape(B, H, W, C)


def run_blocks(x, blocks, heads):
    for bp in blocks:
        x = transmamba_block_forward(x, bp, heads)
    return x


def pixel_unshuffle_nhwc(x, r=2):
    B, H, W, C = x.shape
    x = x.reshape(B, H // r, r, W // r, r, C)
    x = jnp.transpose(x, (0, 1, 3, 5, 2, 4))
    return x.reshape(B, H // r, W // r, C * r * r)


def pixel_shuffle_nhwc(x, r=2):
    B, H, W, C = x.shape
    x = x.reshape(B, H, W, C // (r * r), r, r)
    x = jnp.transpose(x, (0, 1, 4, 2, 5, 3))
    return x.reshape(B, H * r, W * r, C // (r * r))


def downsample_forward(x, w):
    return pixel_unshuffle_nhwc(pallas_conv3x3(x, w), 2)


def upsample_forward(x, w):
    return pixel_shuffle_nhwc(pallas_conv3x3(x, w), 2)


def _concat_reduce(a, b, w):
    """1x1 conv over concat([a, b], channel) done as two fused matmuls."""
    Bsz, H, W, Ca = a.shape
    Cb = b.shape[-1]
    out = matmul2_flat(a.reshape(-1, Ca), b.reshape(-1, Cb), w[:Ca], w[Ca:])
    return out.reshape(Bsz, H, W, w.shape[1])


def transmamba_forward(params, inp_img, heads):
    x = jnp.transpose(inp_img, (0, 2, 3, 1))                     # NCHW -> NHWC once

    feat = pallas_conv3x3(x, params["patch_embed_w"])            # OverlapPatchEmbed
    out_enc1 = run_blocks(feat, params["enc1"], heads[0])
    inp2 = downsample_forward(out_enc1, params["down1_w"])
    out_enc2 = run_blocks(inp2, params["enc2"], heads[1])
    inp3 = downsample_forward(out_enc2, params["down2_w"])
    out_enc3 = run_blocks(inp3, params["enc3"], heads[2])
    inp4 = downsample_forward(out_enc3, params["down3_w"])
    latent = run_blocks(inp4, params["latent"], heads[3])

    d3 = upsample_forward(latent, params["up4_w"])
    d3 = _concat_reduce(d3, out_enc3, params["reduce3_w"])
    d3 = run_blocks(d3, params["dec3"], heads[2])

    d2 = upsample_forward(d3, params["up3_w"])
    d2 = _concat_reduce(d2, out_enc2, params["reduce2_w"])
    d2 = run_blocks(d2, params["dec2"], heads[1])

    d1 = upsample_forward(d2, params["up2_w"])
    d1 = jnp.concatenate([d1, out_enc1], axis=-1)
    d1 = run_blocks(d1, params["dec1"], heads[0])
    d1 = run_blocks(d1, params["refine"], heads[0])

    out = pallas_conv3x3(d1, params["output_w"])
    return jnp.transpose(out, (0, 3, 1, 2)) + inp_img


# ----------------------------------------------------------------------------------
# Deterministic synthetic parameters (kernel-friendly layouts, MXU weights in bf16)
# ----------------------------------------------------------------------------------
class KeyGen:
    def __init__(self, key):
        self.key = key

    def __call__(self):
        self.key, k = jax.random.split(self.key)
        return k


def _winit(kg, shape, fan_in, dtype=MMT):
    w = jax.random.normal(kg(), shape, jnp.float32) * (0.5 / math.sqrt(fan_in))
    return w.astype(dtype)


def init_attention(kg, dim, heads):
    return dict(
        qkv_w=_winit(kg, (dim, dim * 3), dim),
        qkv_dw_w=_winit(kg, (3, 3, dim * 3), 9, dtype=jnp.float32),
        proj_w=_winit(kg, (dim, dim), dim),
        temperature=jnp.ones((heads,), jnp.float32),
    )


def init_ffn(kg, dim, ffn_factor):
    hidden = int(dim * ffn_factor)
    return dict(
        in_w=_winit(kg, (dim, hidden * 2), dim),
        dw_w=_winit(kg, (3, 3, hidden * 2), 9, dtype=jnp.float32),
        out_w=_winit(kg, (hidden, dim), hidden),
        fft_w=jax.random.normal(kg(), (hidden * 2,), jnp.float32),
        fft_b=jax.random.normal(kg(), (hidden * 2,), jnp.float32),
    )


def init_mamba(kg, dim):
    d_inner, d_state, d_conv = 2 * dim, 16, 4
    dt_rank = max(1, math.ceil(dim / 16))
    A_log = jnp.log(jnp.tile(jnp.arange(1, d_state + 1, dtype=jnp.float32)[None, :],
                             (d_inner, 1)))
    return dict(
        in_proj_w=_winit(kg, (dim, 2 * d_inner), dim),
        conv1d_w=_winit(kg, (d_conv, d_inner), d_conv, dtype=jnp.float32),
        conv1d_b=jnp.zeros((d_inner,), jnp.float32),
        x_proj_w=_winit(kg, (d_inner, dt_rank + 2 * d_state), d_inner),
        dt_proj_w=_winit(kg, (dt_rank, d_inner), dt_rank),
        dt_proj_b=jnp.full((d_inner,), -4.6, jnp.float32),
        A_log=A_log,
        D=jnp.ones((d_inner,), jnp.float32),
        out_proj_w=_winit(kg, (d_inner, dim), d_inner),
    )


def init_block(kg, dim, heads, ffn_factor):
    return dict(
        t_norm1_w=jnp.ones((dim,), jnp.float32), t_norm1_b=jnp.zeros((dim,), jnp.float32),
        attn=init_attention(kg, dim, heads),
        t_norm2_w=jnp.ones((dim,), jnp.float32), t_norm2_b=jnp.zeros((dim,), jnp.float32),
        ffn=init_ffn(kg, dim, ffn_factor),
        m_norm1_w=jnp.ones((dim,), jnp.float32), m_norm1_b=jnp.zeros((dim,), jnp.float32),
        mamba1=init_mamba(kg, dim),
        m_norm2_w=jnp.ones((dim,), jnp.float32), m_norm2_b=jnp.zeros((dim,), jnp.float32),
        mamba2=init_mamba(kg, dim),
        fuse_w=_winit(kg, (2 * dim, dim), 2 * dim),
    )


def init_model(key, inp_channels=3, out_channels=3, dim=16,
               num_blocks=(1, 1, 1, 1), num_refinement_blocks=1,
               heads=(1, 2, 4, 8), ffn_factor=2.0):
    kg = KeyGen(key)
    dims = [dim, dim * 2, dim * 4, dim * 8]
    p = {}
    p["patch_embed_w"] = _winit(kg, (3, 3, inp_channels, dim), inp_channels * 9)
    p["enc1"] = [init_block(kg, dims[0], heads[0], ffn_factor) for _ in range(num_blocks[0])]
    p["down1_w"] = _winit(kg, (3, 3, dims[0], dims[0] // 2), dims[0] * 9)
    p["enc2"] = [init_block(kg, dims[1], heads[1], ffn_factor) for _ in range(num_blocks[1])]
    p["down2_w"] = _winit(kg, (3, 3, dims[1], dims[1] // 2), dims[1] * 9)
    p["enc3"] = [init_block(kg, dims[2], heads[2], ffn_factor) for _ in range(num_blocks[2])]
    p["down3_w"] = _winit(kg, (3, 3, dims[2], dims[2] // 2), dims[2] * 9)
    p["latent"] = [init_block(kg, dims[3], heads[3], ffn_factor) for _ in range(num_blocks[3])]
    p["up4_w"] = _winit(kg, (3, 3, dims[3], dims[3] * 2), dims[3] * 9)
    p["reduce3_w"] = _winit(kg, (dims[3], dims[2]), dims[3])
    p["dec3"] = [init_block(kg, dims[2], heads[2], ffn_factor) for _ in range(num_blocks[2])]
    p["up3_w"] = _winit(kg, (3, 3, dims[2], dims[2] * 2), dims[2] * 9)
    p["reduce2_w"] = _winit(kg, (dims[2], dims[1]), dims[2])
    p["dec2"] = [init_block(kg, dims[1], heads[1], ffn_factor) for _ in range(num_blocks[1])]
    p["up2_w"] = _winit(kg, (3, 3, dims[1], dims[1] * 2), dims[1] * 9)
    p["dec1"] = [init_block(kg, dims[1], heads[0], ffn_factor) for _ in range(num_blocks[0])]
    p["refine"] = [init_block(kg, dims[1], heads[0], ffn_factor) for _ in range(num_refinement_blocks)]
    p["output_w"] = _winit(kg, (3, 3, dims[1], out_channels), dims[1] * 9)
    return p


# ----------------------------------------------------------------------------------
if __name__ == "__main__":
    key = jax.random.PRNGKey(0)
    pkey, xkey = jax.random.split(key)

    heads = (1, 2, 4, 8)
    params = init_model(pkey, inp_channels=3, out_channels=3, dim=16,
                        num_blocks=(1, 1, 1, 1), num_refinement_blocks=1,
                        heads=heads, ffn_factor=2.0)

    inp_img = jax.random.normal(xkey, (1, 3, 16, 16), jnp.float32)

    out = transmamba_forward(params, inp_img, heads)
    out = jax.block_until_ready(out)

    assert out.shape == inp_img.shape, out.shape
    assert bool(jnp.all(jnp.isfinite(out)))
    print("KERNEL_OK")
</pallas_src>

<mosaic_0001>
module attributes {stable_mosaic.version = 11 : i64} {
  func.func @_conv3x3_kernel(%arg0: i32, %arg1: memref<1x18x18x3xf32, #tpu.memory_space<vmem>>, %arg2: memref<3x3x3x16xbf16, #tpu.memory_space<vmem>>, %arg3: memref<1x16x16x16xf32, #tpu.memory_space<vmem>>) attributes {dimension_semantics = [#tpu.dimension_semantics<parallel>], iteration_bounds = array<i64: 1>, scalar_prefetch = 0 : i64, scratch_operands = 0 : i64, tpu.core_type = #tpu.core_type<tc>, window_params = [{transform_indices = @transform_0, window_bounds = array<i64: 1, 18, 18, 3>}, {pipeline_mode = #tpu.pipeline_mode<synchronous>, transform_indices = @transform_1, window_bounds = array<i64: 3, 3, 3, 16>}, {transform_indices = @transform_2, window_bounds = array<i64: 1, 16, 16, 16>}]} {
    %cst = arith.constant 0.000000e+00 : f32
    %0 = vector.broadcast %cst : f32 to vector<256x16xf32>
    %c0 = arith.constant 0 : index
    %c0_0 = arith.constant 0 : index
    %c0_1 = arith.constant 0 : index
    %c0_2 = arith.constant 0 : index
    %1 = vector.load %arg1[%c0, %c0_0, %c0_1, %c0_2] : memref<1x18x18x3xf32, #tpu.memory_space<vmem>>, vector<1x16x16x3xf32>
    %2 = vector.shape_cast %1 : vector<1x16x16x3xf32> to vector<16x16x3xf32>
    %3 = vector.shape_cast %2 : vector<16x16x3xf32> to vector<256x3xf32>
    %4 = arith.truncf %3 : vector<256x3xf32> to vector<256x3xbf16>
    %c0_3 = arith.constant 0 : index
    %c0_4 = arith.constant 0 : index
    %c0_5 = arith.constant 0 : index
    %c0_6 = arith.constant 0 : index
    %5 = vector.load %arg2[%c0_3, %c0_4, %c0_5, %c0_6] : memref<3x3x3x16xbf16, #tpu.memory_space<vmem>>, vector<1x1x3x16xbf16>
    %6 = vector.shape_cast %5 : vector<1x1x3x16xbf16> to vector<3x16xbf16>
    %cst_7 = arith.constant dense<0.000000e+00> : vector<256x16xf32>
    %7 = tpu.matmul %4, %6, %cst_7 {dimension_numbers = #tpu.dot_dimension_numbers<[1], [0], [0], [1], [0, 0, 1, 1], [], []>} : vector<256x3xbf16>, vector<3x16xbf16>, vector<256x16xf32> -> vector<256x16xf32>
    %8 = arith.addf %0, %7 : vector<256x16xf32>
    %c0_8 = arith.constant 0 : index
    %c0_9 = arith.constant 0 : index
    %c1 = arith.constant 1 : index
    %c0_10 = arith.constant 0 : index
    %9 = vector.load %arg1[%c0_8, %c0_9, %c1, %c0_10] : memref<1x18x18x3xf32, #tpu.memory_space<vmem>>, vector<1x16x16x3xf32>
    %10 = vector.shape_cast %9 : vector<1x16x16x3xf32> to vector<16x16x3xf32>
    %11 = vector.shape_cast %10 : vector<16x16x3xf32> to vector<256x3xf32>
    %12 = arith.truncf %11 : vector<256x3xf32> to vector<256x3xbf16>
    %c0_11 = arith.constant 0 : index
    %c1_12 = arith.constant 1 : index
    %c0_13 = arith.constant 0 : index
    %c0_14 = arith.constant 0 : index
    %13 = vector.load %arg2[%c0_11, %c1_12, %c0_13, %c0_14] : memref<3x3x3x16xbf16, #tpu.memory_space<vmem>>, vector<1x1x3x16xbf16>
    %14 = vector.shape_cast %13 : vector<1x1x3x16xbf16> to vector<3x16xbf16>
    %cst_15 = arith.constant dense<0.000000e+00> : vector<256x16xf32>
    %15 = tpu.matmul %12, %14, %cst_15 {dimension_numbers = #tpu.dot_dimension_numbers<[1], [0], [0], [1], [0, 0, 1, 1], [], []>} : vector<256x3xbf16>, vector<3x16xbf16>, vector<256x16xf32> -> vector<256x16xf32>
    %16 = arith.addf %8, %15 : vector<256x16xf32>
    %c0_16 = arith.constant 0 : index
    %c0_17 = arith.constant 0 : index
    %c2 = arith.constant 2 : index
    %c0_18 = arith.constant 0 : index
    %17 = vector.load %arg1[%c0_16, %c0_17, %c2, %c0_18] : memref<1x18x18x3xf32, #tpu.memory_space<vmem>>, vector<1x16x16x3xf32>
    %18 = vector.shape_cast %17 : vector<1x16x16x3xf32> to vector<16x16x3xf32>
    %19 = vector.shape_cast %18 : vector<16x16x3xf32> to vector<256x3xf32>
    %20 = arith.truncf %19 : vector<256x3xf32> to vector<256x3xbf16>
    %c0_19 = arith.constant 0 : index
    %c2_20 = arith.constant 2 : index
    %c0_21 = arith.constant 0 : index
    %c0_22 = arith.constant 0 : index
    %21 = vector.load %arg2[%c0_19, %c2_20, %c0_21, %c0_22] : memref<3x3x3x16xbf16, #tpu.memory_space<vmem>>, vector<1x1x3x16xbf16>
    %22 = vector.shape_cast %21 : vector<1x1x3x16xbf16> to vector<3x16xbf16>
    %cst_23 = arith.constant dense<0.000000e+00> : vector<256x16xf32>
    %23 = tpu.matmul %20, %22, %cst_23 {dimension_numbers = #tpu.dot_dimension_numbers<[1], [0], [0], [1], [0, 0, 1, 1], [], []>} : vector<256x3xbf16>, vector<3x16xbf16>, vector<256x16xf32> -> vector<256x16xf32>
    %24 = arith.addf %16, %23 : vector<256x16xf32>
    %c0_24 = arith.constant 0 : index
    %c1_25 = arith.constant 1 : index
    %c0_26 = arith.constant 0 : index
    %c0_27 = arith.constant 0 : index
    %25 = vector.load %arg1[%c0_24, %c1_25, %c0_26, %c0_27] : memref<1x18x18x3xf32, #tpu.memory_space<vmem>>, vector<1x16x16x3xf32>
    %26 = vector.shape_cast %25 : vector<1x16x16x3xf32> to vector<16x16x3xf32>
    %27 = vector.shape_cast %26 : vector<16x16x3xf32> to vector<256x3xf32>
    %28 = arith.truncf %27 : vector<256x3xf32> to vector<256x3xbf16>
    %c1_28 = arith.constant 1 : index
    %c0_29 = arith.constant 0 : index
    %c0_30 = arith.constant 0 : index
    %c0_31 = arith.constant 0 : index
    %29 = vector.load %arg2[%c1_28, %c0_29, %c0_30, %c0_31] : memref<3x3x3x16xbf16, #tpu.memory_space<vmem>>, vector<1x1x3x16xbf16>
    %30 = vector.shape_cast %29 : vector<1x1x3x16xbf16> to vector<3x16xbf16>
    %cst_32 = arith.constant dense<0.000000e+00> : vector<256x16xf32>
    %31 = tpu.matmul %28, %30, %cst_32 {dimension_numbers = #tpu.dot_dimension_numbers<[1], [0], [0], [1], [0, 0, 1, 1], [], []>} : vector<256x3xbf16>, vector<3x16xbf16>, vector<256x16xf32> -> vector<256x16xf32>
    %32 = arith.addf %24, %31 : vector<256x16xf32>
    %c0_33 = arith.constant 0 : index
    %c1_34 = arith.constant 1 : index
    %c1_35 = arith.constant 1 : index
    %c0_36 = arith.constant 0 : index
    %33 = vector.load %arg1[%c0_33, %c1_34, %c1_35, %c0_36] : memref<1x18x18x3xf32, #tpu.memory_space<vmem>>, vector<1x16x16x3xf32>
    %34 = vector.shape_cast %33 : vector<1x16x16x3xf32> to vector<16x16x3xf32>
    %35 = vector.shape_cast %34 : vector<16x16x3xf32> to vector<256x3xf32>
    %36 = arith.truncf %35 : vector<256x3xf32> to vector<256x3xbf16>
    %c1_37 = arith.constant 1 : index
    %c1_38 = arith.constant 1 : index
    %c0_39 = arith.constant 0 : index
    %c0_40 = arith.constant 0 : index
    %37 = vector.load %arg2[%c1_37, %c1_38, %c0_39, %c0_40] : memref<3x3x3x16xbf16, #tpu.memory_space<vmem>>, vector<1x1x3x16xbf16>
    %38 = vector.shape_cast %37 : vector<1x1x3x16xbf16> to vector<3x16xbf16>
    %cst_41 = arith.constant dense<0.000000e+00> : vector<256x16xf32>
    %39 = tpu.matmul %36, %38, %cst_41 {dimension_numbers = #tpu.dot_dimension_numbers<[1], [0], [0], [1], [0, 0, 1, 1], [], []>} : vector<256x3xbf16>, vector<3x16xbf16>, vector<256x16xf32> -> vector<256x16xf32>
    %40 = arith.addf %32, %39 : vector<256x16xf32>
    %c0_42 = arith.constant 0 : index
    %c1_43 = arith.constant 1 : index
    %c2_44 = arith.constant 2 : index
    %c0_45 = arith.constant 0 : index
    %41 = vector.load %arg1[%c0_42, %c1_43, %c2_44, %c0_45] : memref<1x18x18x3xf32, #tpu.memory_space<vmem>>, vector<1x16x16x3xf32>
    %42 = vector.shape_cast %41 : vector<1x16x16x3xf32> to vector<16x16x3xf32>
    %43 = vector.shape_cast %42 : vector<16x16x3xf32> to vector<256x3xf32>
    %44 = arith.truncf %43 : vector<256x3xf32> to vector<256x3xbf16>
    %c1_46 = arith.constant 1 : index
    %c2_47 = arith.constant 2 : index
    %c0_48 = arith.constant 0 : index
    %c0_49 = arith.constant 0 : index
    %45 = vector.load %arg2[%c1_46, %c2_47, %c0_48, %c0_49] : memref<3x3x3x16xbf16, #tpu.memory_space<vmem>>, vector<1x1x3x16xbf16>
    %46 = vector.shape_cast %45 : vector<1x1x3x16xbf16> to vector<3x16xbf16>
    %cst_50 = arith.constant dense<0.000000e+00> : vector<256x16xf32>
    %47 = tpu.matmul %44, %46, %cst_50 {dimension_numbers = #tpu.dot_dimension_numbers<[1], [0], [0], [1], [0, 0, 1, 1], [], []>} : vector<256x3xbf16>, vector<3x16xbf16>, vector<256x16xf32> -> vector<256x16xf32>
    %48 = arith.addf %40, %47 : vector<256x16xf32>
    %c0_51 = arith.constant 0 : index
    %c2_52 = arith.constant 2 : index
    %c0_53 = arith.constant 0 : index
    %c0_54 = arith.constant 0 : index
    %49 = vector.load %arg1[%c0_51, %c2_52, %c0_53, %c0_54] : memref<1x18x18x3xf32, #tpu.memory_space<vmem>>, vector<1x16x16x3xf32>
    %50 = vector.shape_cast %49 : vector<1x16x16x3xf32> to vector<16x16x3xf32>
    %51 = vector.shape_cast %50 : vector<16x16x3xf32> to vector<256x3xf32>
    %52 = arith.truncf %51 : vector<256x3xf32> to vector<256x3xbf16>
    %c2_55 = arith.constant 2 : index
    %c0_56 = arith.constant 0 : index
    %c0_57 = arith.constant 0 : index
    %c0_58 = arith.constant 0 : index
    %53 = vector.load %arg2[%c2_55, %c0_56, %c0_57, %c0_58] : memref<3x3x3x16xbf16, #tpu.memory_space<vmem>>, vector<1x1x3x16xbf16>
    %54 = vector.shape_cast %53 : vector<1x1x3x16xbf16> to vector<3x16xbf16>
    %cst_59 = arith.constant dense<0.000000e+00> : vector<256x16xf32>
    %55 = tpu.matmul %52, %54, %cst_59 {dimension_numbers = #tpu.dot_dimension_numbers<[1], [0], [0], [1], [0, 0, 1, 1], [], []>} : vector<256x3xbf16>, vector<3x16xbf16>, vector<256x16xf32> -> vector<256x16xf32>
    %56 = arith.addf %48, %55 : vector<256x16xf32>
    %c0_60 = arith.constant 0 : index
    %c2_61 = arith.constant 2 : index
    %c1_62 = arith.constant 1 : index
    %c0_63 = arith.constant 0 : index
    %57 = vector.load %arg1[%c0_60, %c2_61, %c1_62, %c0_63] : memref<1x18x18x3xf32, #tpu.memory_space<vmem>>, vector<1x16x16x3xf32>
    %58 = vector.shape_cast %57 : vector<1x16x16x3xf32> to vector<16x16x3xf32>
    %59 = vector.shape_cast %58 : vector<16x16x3xf32> to vector<256x3xf32>
    %60 = arith.truncf %59 : vector<256x3xf32> to vector<256x3xbf16>
    %c2_64 = arith.constant 2 : index
    %c1_65 = arith.constant 1 : index
    %c0_66 = arith.constant 0 : index
    %c0_67 = arith.constant 0 : index
    %61 = vector.load %arg2[%c2_64, %c1_65, %c0_66, %c0_67] : memref<3x3x3x16xbf16, #tpu.memory_space<vmem>>, vector<1x1x3x16xbf16>
    %62 = vector.shape_cast %61 : vector<1x1x3x16xbf16> to vector<3x16xbf16>
    %cst_68 = arith.constant dense<0.000000e+00> : vector<256x16xf32>
    %63 = tpu.matmul %60, %62, %cst_68 {dimension_numbers = #tpu.dot_dimension_numbers<[1], [0], [0], [1], [0, 0, 1, 1], [], []>} : vector<256x3xbf16>, vector<3x16xbf16>, vector<256x16xf32> -> vector<256x16xf32>
    %64 = arith.addf %56, %63 : vector<256x16xf32>
    %c0_69 = arith.constant 0 : index
    %c2_70 = arith.constant 2 : index
    %c2_71 = arith.constant 2 : index
    %c0_72 = arith.constant 0 : index
    %65 = vector.load %arg1[%c0_69, %c2_70, %c2_71, %c0_72] : memref<1x18x18x3xf32, #tpu.memory_space<vmem>>, vector<1x16x16x3xf32>
    %66 = vector.shape_cast %65 : vector<1x16x16x3xf32> to vector<16x16x3xf32>
    %67 = vector.shape_cast %66 : vector<16x16x3xf32> to vector<256x3xf32>
    %68 = arith.truncf %67 : vector<256x3xf32> to vector<256x3xbf16>
    %c2_73 = arith.constant 2 : index
    %c2_74 = arith.constant 2 : index
    %c0_75 = arith.constant 0 : index
    %c0_76 = arith.constant 0 : index
    %69 = vector.load %arg2[%c2_73, %c2_74, %c0_75, %c0_76] : memref<3x3x3x16xbf16, #tpu.memory_space<vmem>>, vector<1x1x3x16xbf16>
    %70 = vector.shape_cast %69 : vector<1x1x3x16xbf16> to vector<3x16xbf16>
    %cst_77 = arith.constant dense<0.000000e+00> : vector<256x16xf32>
    %71 = tpu.matmul %68, %70, %cst_77 {dimension_numbers = #tpu.dot_dimension_numbers<[1], [0], [0], [1], [0, 0, 1, 1], [], []>} : vector<256x3xbf16>, vector<3x16xbf16>, vector<256x16xf32> -> vector<256x16xf32>
    %72 = arith.addf %64, %71 : vector<256x16xf32>
    %73 = vector.shape_cast %72 : vector<256x16xf32> to vector<16x16x16xf32>
    %c0_78 = arith.constant 0 : index
    %c0_79 = arith.constant 0 : index
    %c0_80 = arith.constant 0 : index
    %c0_81 = arith.constant 0 : index
    %74 = vector.load %arg3[%c0_78, %c0_79, %c0_80, %c0_81] : memref<1x16x16x16xf32, #tpu.memory_space<vmem>>, vector<1x16x16x16xf32>
    %75 = vector.shape_cast %74 : vector<1x16x16x16xf32> to vector<16x16x16xf32>
    %76 = vector.shape_cast %73 : vector<16x16x16xf32> to vector<1x16x16x16xf32>
    tpu.vector_store %arg3[%c0_78, %c0_79, %c0_80, %c0_81], %76 {strides = array<i32>} : memref<1x16x16x16xf32, #tpu.memory_space<vmem>>, vector<1x16x16x16xf32>,
    return
  }
  func.func @transform_0(%arg0: i32) -> (i32, i32, i32, i32) {
    %c0_i32 = arith.constant 0 : i32
    %c0_i32_0 = arith.constant 0 : i32
    %c0_i32_1 = arith.constant 0 : i32
    %c0_i32_2 = arith.constant 0 : i32
    return %arg0, %c0_i32, %c0_i32_0, %c0_i32_1 : i32, i32, i32, i32
  }
  func.func @transform_1(%arg0: i32) -> (i32, i32, i32, i32) {
    %c0_i32 = arith.constant 0 : i32
    %c0_i32_0 = arith.constant 0 : i32
    %c0_i32_1 = arith.constant 0 : i32
    %c0_i32_2 = arith.constant 0 : i32
    %c0_i32_3 = arith.constant 0 : i32
    return %c0_i32, %c0_i32_0, %c0_i32_1, %c0_i32_2 : i32, i32, i32, i32
  }
  func.func @transform_2(%arg0: i32) -> (i32, i32, i32, i32) {
    %c0_i32 = arith.constant 0 : i32
    %c0_i32_0 = arith.constant 0 : i32
    %c0_i32_1 = arith.constant 0 : i32
    %c0_i32_2 = arith.constant 0 : i32
    return %arg0, %c0_i32, %c0_i32_0, %c0_i32_1 : i32, i32, i32, i32
  }
}

</mosaic_0001>

<bundles_post_ra>
// kernel: pallas_conv3x3.1
= control target key start
LH: loop header
LB: loop body
LE: loop exit
PB: predicated region body
PF: predicated region fallthrough
CT: control target
= control target key end

     0   :  { %vm161_vm0 = vcmask 1040384   ;;  %vm162_vm1 = vcmask 1041408   ;;  %v3739_v2 = vmov 65535   ;;  %vm112_vm2 = vcmask 23552   ;;  %s4556_s0 = inlined_call_operand.vmem [shape: f32[1,18,18,3], index: 0, kind: input, shape index: {}]   ;;  %s4557_s1 = inlined_call_operand.vmem [shape: bf16[3,3,3,16], index: 1, kind: input, shape index: {}]   ;;  %s4558_s2 = inlined_call_operand.hbm [shape: f32[1,16,16,16], index: 2, kind: output, shape index: {}]  }
   0x1   :  { %v2650_v0 = vld [vmem:[%s4557_s1 + $0x2] sm:$0x3]  ;;  %v163_v3 = vsel %vm161_vm0, 4294967295, %v3739_v2  ;;  %v2781_v4 = vld [vmem:[%s4557_s1 + $0x8] sm:$0x3]  ;;  %v2749_v6 = vld [vmem:[%s4556_s0 + $0x19] sm:$0xff] }
   0x2   :  { %v62_v1 = vld [vmem:[%s4556_s0 + $0x1] sm:$0xff]  ;;  %v63_v5 = vld [vmem:[%s4556_s0 + $0x9] sm:$0xff]  ;;  %v3773_v7 = vsel %vm162_vm1, %v163_v3, 0  ;;  %v2751_v11 = vld [vmem:[%s4556_s0 + $0x31] sm:$0xff] }
   0x3   :  { %v94_v8 = vpack.c.bf16 %v63_v5, %v62_v1  ;;  %v2750_v9 = vld [vmem:[%s4556_s0 + $0x21] sm:$0xff]  ;;  %v166_v12 = vand.u32 %v2650_v0, %v3773_v7  ;;  %v3786_v13 = vand.u32 %v2781_v4, %v3773_v7  ;;  %v2752_v16 = vld [vmem:[%s4556_s0 + $0x39] sm:$0xff]  ;;  %v2830_v17 = vld [vmem:[%s4557_s1 + $0xa] sm:$0x3] }
   0x4   :  { %v61_v10 = vld [vmem:[%s4557_s1] sm:$0x3]  ;;  %v1162_v14 = vpack.c.bf16 %v2750_v9, %v2749_v6  ;;  %v1523_v18 = vand.u32 %v2830_v17, %v3773_v7  ;;  %v2753_v19 = vld [vmem:[%s4556_s0 + $0x49] sm:$0xff]  ;;  %v2754_v20 = vld [vmem:[%s4556_s0 + $0x51] sm:$0xff]  ;;  %v3804_v21 = vpack.c.bf16 %v2752_v16, %v2751_v11 }
   0x5   :  { %v378_v15 = vand.u32 %v3773_v7, %v61_v10  ;;  %3149 = vmatprep.mubr.msk.bf16.mxu1 %vm112_vm2, %v94_v8  ;;  %3147 = vmatprep.subr.bf16.mxu1 %v166_v12  ;;  %v3808_v22 = vpack.c.bf16 %v2754_v20, %v2753_v19  ;;  %v2879_v23 = vld [vmem:[%s4557_s1 + $0xc] sm:$0x3]  ;;  %v2755_v24 = vld [vmem:[%s4556_s0 + $0x61] sm:$0xff]  ;;  %v2757_v27 = vld [vmem:[%s4556_s0 + $0x79] sm:$0xff] }
   0x6   :  { %3283 = vmatprep.subr.bf16.mxu0 %v3786_v13  ;;  %3148 = vmatpush3.bf16.msra.mxu1 %v166_v12  ;;  %v2756_v25 = vld [vmem:[%s4556_s0 + $0x69] sm:$0xff]  ;;  %v1818_v26 = vand.u32 %v2879_v23, %v3773_v7  ;;  %v2758_v28 = vld [vmem:[%s4556_s0 + $0x81] sm:$0xff]  ;;  %v2759_v31 = vld [vmem:[%s4556_s0 + $0x91] sm:$0xff] }
   0x7   :  { %3284 = vmatpush3.bf16.msra.mxu0 %v3786_v13  ;;  %3285 = vmatprep.mubr.msk.bf16.mxu0 %vm112_vm2, %v1162_v14  ;;  %v3833_v29 = vpack.c.bf16 %v2756_v25, %v2755_v24  ;;  %v3835_v30 = vpack.c.bf16 %v2758_v28, %v2757_v27  ;;  %v2760_v32 = vld [vmem:[%s4556_s0 + $0x99] sm:$0xff]  ;;  %v2761_v33 = vld [vmem:[%s4556_s0 + $0xa9] sm:$0xff]  ;;  %v2762_v34 = vld [vmem:[%s4556_s0 + $0xb1] sm:$0xff] }
   0x8   :  { %3181 = vmatprep.subr.bf16.mxu1 %v378_v15  ;;  %3317 = vmatprep.subr.bf16.mxu0 %v1523_v18  ;;  %v2683_v35 = vld [vmem:[%s4557_s1 + $0x4] sm:$0x3]  ;;  %v3860_v36 = vpack.c.bf16 %v2760_v32, %v2759_v31  ;;  %v3865_v38 = vpack.c.bf16 %v2762_v34, %v2761_v33  ;;  %v2764_v40 = vld [vmem:[%s4556_s0 + $0xc9] sm:$0xff]  ;;  %v2798_v41 = vld [vmem:[%s4556_s0 + $0x1a] sm:$0xff] }
   0x9   :  { %3150 = vmatmul.mubr.msk.bf16.vlgmr.msra.gmra.mrb[0].mxu1 %vm112_vm2, %v1162_v14  ;;  %v3863_v37 = vand.u32 %v2683_v35, %v3773_v7  ;;  %v2763_v39 = vld [vmem:[%s4556_s0 + $0xc1] sm:$0xff]  ;;  %v80_v45 = vld [vmem:[%s4556_s0 + $0xd9] sm:$0xff]  ;;  %v82_v49 = vld [vmem:[%s4556_s0 + $0xf1] sm:$0xff] }
   0xa   :  { %3286 = vmatmul.mubr.msk.bf16.vlgmr.msra.gmra.mrb[0].mxu0 %vm112_vm2, %v3804_v21  ;;  %3182 = vmatpush3.bf16.msra.mxu1 %v378_v15  ;;  %v2799_v42 = vld [vmem:[%s4556_s0 + $0x22] sm:$0xff]  ;;  %v3888_v43 = vpack.c.bf16 %v2764_v40, %v2763_v39  ;;  %v2800_v47 = vld [vmem:[%s4556_s0 + $0x32] sm:$0xff]  ;;  %v2801_v48 = vld [vmem:[%s4556_s0 + $0x3a] sm:$0xff] }
   0xb   :  { %3318 = vmatpush3.bf16.msra.mxu0 %v1523_v18  ;;  %3153 = vmatprep.mubr.msk.bf16.mxu1 %vm112_vm2, %v3804_v21  ;;  %v3890_v44 = vpack.c.bf16 %v2799_v42, %v2798_v41  ;;  %v81_v46 = vld [vmem:[%s4556_s0 + $0xe1] sm:$0xff]  ;;  %v83_v50 = vld [vmem:[%s4556_s0 + $0xf9] sm:$0xff]  ;;  %v2802_v51 = vld [vmem:[%s4556_s0 + $0x4a] sm:$0xff]  ;;  %v3929_v55 = vpack.c.bf16 %v2801_v48, %v2800_v47 }
   0xc   :  { %3289 = vmatprep.mubr.msk.bf16.mxu0 %vm112_vm2, %v3808_v22  ;;  %3351 = vmatprep.subr.bf16.mxu0 %v1818_v26  ;;  %v2803_v52 = vld [vmem:[%s4556_s0 + $0x52] sm:$0xff]  ;;  %v2928_v53 = vld [vmem:[%s4557_s1 + $0xe] sm:$0x3]  ;;  %v3927_v54 = vpack.c.bf16 %v81_v46, %v80_v45 }
   0xd   :  { %3215 = vmatprep.subr.bf16.mxu1 %v3863_v37 }
  0x11   :  { %3154 = vmatmul.mubr.msk.bf16.gmra.mrb[4].mxu1 %vm112_vm2, %v3808_v22 }
  0x12   :  { %3290 = vmatmul.mubr.msk.bf16.gmra.mrb[4].mxu0 %vm112_vm2, %v3833_v29  ;;  %3157 = vmatprep.mubr.msk.bf16.mxu1 %vm112_vm2, %v3833_v29 }
  0x13   :  { %3293 = vmatprep.mubr.msk.bf16.mxu0 %vm112_vm2, %v3835_v30 }
  0x19   :  { %3158 = vmatmul.mubr.msk.bf16.gmra.mrb[8].mxu1 %vm112_vm2, %v3835_v30 }
  0x1a   :  { %3294 = vmatmul.mubr.msk.bf16.gmra.mrb[8].mxu0 %vm112_vm2, %v3860_v36  ;;  %3161 = vmatprep.mubr.msk.bf16.mxu1 %vm112_vm2, %v3860_v36 }
  0x1b   :  { %3297 = vmatprep.mubr.msk.bf16.mxu0 %vm112_vm2, %v3865_v38 }
  0x21   :  { %3162 = vmatmul.mubr.msk.bf16.gmra.mrb[12].mxu1 %vm112_vm2, %v3865_v38 }
  0x22   :  { %3298 = vmatmul.mubr.msk.bf16.gmra.mrb[12].mxu0 %vm112_vm2, %v3888_v43  ;;  %3165 = vmatprep.mubr.msk.bf16.mxu1 %vm112_vm2, %v3888_v43 }
  0x23   :  { %3319 = vmatprep.mubr.msk.bf16.mxu0 %vm112_vm2, %v3890_v44 }
  0x24   :  { %7 = vsyncpa [#allocation3], 0  ;;  %v3931_v56 = vpack.c.bf16 %v83_v50, %v82_v49  ;;  %v3933_v57 = vpack.c.bf16 %v2803_v52, %v2802_v51  ;;  %v3936_v58 = vand.u32 %v2928_v53, %v3773_v7  ;;  %v84_v59 = vld [vmem:[%s4556_s0 + $0x109] sm:$0xff]  ;;  %v85_v60 = vld [vmem:[%s4556_s0 + $0x111] sm:$0xff]  ;;  %vm2601_vm3 = vcmask 130048  }
  0x25   :  { %v2804_v61 = vld [vmem:[%s4556_s0 + $0x62] sm:$0xff]  ;;  %v2805_v62 = vld [vmem:[%s4556_s0 + $0x6a] sm:$0xff]  ;;  %v2806_v1 = vld [vmem:[%s4556_s0 + $0x7a] sm:$0xff]  ;;  %v3971_v3 = vpack.c.bf16 %v85_v60, %v84_v59 }
  0x26   :  { %v86_v63 = vld [vmem:[%s4556_s0 + $0x121] sm:$0xff]  ;;  %v87_v0 = vld [vmem:[%s4556_s0 + $0x129] sm:$0xff]  ;;  %v3973_v4 = vpack.c.bf16 %v2805_v62, %v2804_v61  ;;  %v88_v8 = vld [vmem:[%s4556_s0 + $0x139] sm:$0xff] }
  0x27   :  { %v2807_v2 = vld [vmem:[%s4556_s0 + $0x82] sm:$0xff]  ;;  %v3975_v5 = vpack.c.bf16 %v87_v0, %v86_v63  ;;  %v2808_v10 = vld [vmem:[%s4556_s0 + $0x92] sm:$0xff]  ;;  %v2809_v11 = vld [vmem:[%s4556_s0 + $0x9a] sm:$0xff] }
  0x28   :  { %v3977_v6 = vpack.c.bf16 %v2807_v2, %v2806_v1  ;;  %v89_v9 = vld [vmem:[%s4556_s0 + $0x141] sm:$0xff]  ;;  %v90_v12 = vld [vmem:[%s4556_s0 + $0x151] sm:$0xff]  ;;  %v91_v14 = vld [vmem:[%s4556_s0 + $0x159] sm:$0xff]  ;;  %v4013_v18 = vpack.c.bf16 %v2809_v11, %v2808_v10 }
  0x29   :  { %3166 = vmatmul.mubr.msk.bf16.gmra.mrb[16].mxu1 %vm112_vm2, %v3927_v54  ;;  %v2810_v15 = vld [vmem:[%s4556_s0 + $0xaa] sm:$0xff]  ;;  %v2811_v16 = vld [vmem:[%s4556_s0 + $0xb2] sm:$0xff]  ;;  %v4011_v17 = vpack.c.bf16 %v89_v9, %v88_v8  ;;  %v4015_v19 = vpack.c.bf16 %v91_v14, %v90_v12  ;;  %v2812_v25 = vld [vmem:[%s4556_s0 + $0xc2] sm:$0xff] }
  0x2a   :  { %3320 = vmatmul.mubr.msk.bf16.vlgmr.msra.gmra.mrb[0].mxu0 %vm112_vm2, %v3929_v55  ;;  %3169 = vmatprep.mubr.msk.bf16.mxu1 %vm112_vm2, %v3931_v56  ;;  %v4017_v20 = vpack.c.bf16 %v2811_v16, %v2810_v15  ;;  %v92_v23 = vld [vmem:[%s4556_s0 + $0x169] sm:$0xff]  ;;  %v93_v24 = vld [vmem:[%s4556_s0 + $0x171] sm:$0xff]  ;;  %v13_v27 = vld [vmem:[%s4556_s0] sm:$0xff] }
  0x2b   :  { %3352 = vmatpush3.bf16.msra.mxu0 %v1818_v26  ;;  %3323 = vmatprep.mubr.msk.bf16.mxu0 %vm112_vm2, %v3933_v57  ;;  %v2813_v26 = vld [vmem:[%s4556_s0 + $0xca] sm:$0xff]  ;;  %v2814_v31 = vld [vmem:[%s4556_s0 + $0xda] sm:$0xff]  ;;  %v2815_v32 = vld [vmem:[%s4556_s0 + $0xe2] sm:$0xff]  ;;  %v4051_v33 = vpack.c.bf16 %v93_v24, %v92_v23 }
  0x2c   :  { %3385 = vmatprep.subr.bf16.mxu0 %v3936_v58  ;;  %v14_v28 = vld [vmem:[%s4556_s0 + $0x8] sm:$0xff]  ;;  %v4053_v34 = vpack.c.bf16 %v2813_v26, %v2812_v25  ;;  %v4055_v39 = vpack.c.bf16 %v2815_v32, %v2814_v31  ;;  %v15_v40 = vld [vmem:[%s4556_s0 + $0x18] sm:$0xff]  ;;  %v16_v41 = vld [vmem:[%s4556_s0 + $0x20] sm:$0xff] }
  0x2d   :  { %v45_v35 = vpack.c.bf16 %v14_v28, %v13_v27  ;;  %v2816_v42 = vld [vmem:[%s4556_s0 + $0xf2] sm:$0xff]  ;;  %v2817_v45 = vld [vmem:[%s4556_s0 + $0xfa] sm:$0xff]  ;;  %v2818_v48 = vld [vmem:[%s4556_s0 + $0x10a] sm:$0xff]  ;;  %v4091_v51 = vpack.c.bf16 %v16_v41, %v15_v40 }
  0x2e   :  { %v17_v46 = vld [vmem:[%s4556_s0 + $0x30] sm:$0xff]  ;;  %v18_v47 = vld [vmem:[%s4556_s0 + $0x38] sm:$0xff]  ;;  %v2732_v50 = vld [vmem:[%s4557_s1 + $0x6] sm:$0x3]  ;;  %v4093_v52 = vpack.c.bf16 %v2817_v45, %v2816_v42 }
  0x2f   :  { %v2819_v49 = vld [vmem:[%s4556_s0 + $0x112] sm:$0xff]  ;;  %v4095_v53 = vpack.c.bf16 %v18_v47, %v17_v46  ;;  %v4100_v60 = vand.u32 %v2732_v50, %v3773_v7  ;;  %v19_v61 = vld [vmem:[%s4556_s0 + $0x48] sm:$0xff]  ;;  %v21_v1 = vld [vmem:[%s4556_s0 + $0x60] sm:$0xff] }
  0x30   :  { %v4097_v59 = vpack.c.bf16 %v2819_v49, %v2818_v48  ;;  %v20_v62 = vld [vmem:[%s4556_s0 + $0x50] sm:$0xff]  ;;  %v2820_v63 = vld [vmem:[%s4556_s0 + $0x122] sm:$0xff]  ;;  %v2822_v2 = vld [vmem:[%s4556_s0 + $0x13a] sm:$0xff] }
  0x31   :  { %3170 = vmatmul.mubr.msk.bf16.gmra.mrb[20].mxu1 %vm112_vm2, %v3971_v3  ;;  %v2821_v0 = vld [vmem:[%s4556_s0 + $0x12a] sm:$0xff]  ;;  %v2823_v8 = vld [vmem:[%s4556_s0 + $0x142] sm:$0xff]  ;;  %v4136_v9 = vpack.c.bf16 %v20_v62, %v19_v61  ;;  %v23_v14 = vld [vmem:[%s4556_s0 + $0x78] sm:$0xff] }
  0x32   :  { %3324 = vmatmul.mubr.msk.bf16.gmra.mrb[4].mxu0 %vm112_vm2, %v3973_v4  ;;  %3173 = vmatprep.mubr.msk.bf16.mxu1 %vm112_vm2, %v3975_v5  ;;  %v4138_v10 = vpack.c.bf16 %v2821_v0, %v2820_v63  ;;  %v4142_v12 = vpack.c.bf16 %v2823_v8, %v2822_v2  ;;  %v24_v15 = vld [vmem:[%s4556_s0 + $0x80] sm:$0xff]  ;;  %v2824_v16 = vld [vmem:[%s4556_s0 + $0x152] sm:$0xff]  ;;  %v2826_v26 = vld [vmem:[%s4556_s0 + $0x16a] sm:$0xff] }
  0x33   :  { %3327 = vmatprep.mubr.msk.bf16.mxu0 %vm112_vm2, %v3977_v6  ;;  %v2825_v23 = vld [vmem:[%s4556_s0 + $0x15a] sm:$0xff]  ;;  %v25_v24 = vld [vmem:[%s4556_s0 + $0x90] sm:$0xff]  ;;  %v4176_v28 = vpack.c.bf16 %v24_v15, %v23_v14  ;;  %v27_v40 = vld [vmem:[%s4556_s0 + $0xa8] sm:$0xff] }
  0x34   :  { %v26_v25 = vld [vmem:[%s4556_s0 + $0x98] sm:$0xff]  ;;  %v4178_v31 = vpack.c.bf16 %v2825_v23, %v2824_v16  ;;  %v28_v41 = vld [vmem:[%s4556_s0 + $0xb0] sm:$0xff]  ;;  %v2828_v42 = vld [vmem:[%s4556_s0 + $0x182] sm:$0xff] }
  0x35   :  { %v2827_v27 = vld [vmem:[%s4556_s0 + $0x172] sm:$0xff]  ;;  %v4180_v32 = vpack.c.bf16 %v26_v25, %v25_v24  ;;  %v2829_v45 = vld [vmem:[%s4556_s0 + $0x18a] sm:$0xff]  ;;  %v29_v46 = vld [vmem:[%s4556_s0 + $0xc0] sm:$0xff]  ;;  %v4210_v48 = vpack.c.bf16 %v28_v41, %v27_v40 }
  0x36   :  { %v30_v47 = vld [vmem:[%s4556_s0 + $0xc8] sm:$0xff]  ;;  %v4212_v49 = vpack.c.bf16 %v2829_v45, %v2828_v42  ;;  %v31_v61 = vld [vmem:[%s4556_s0 + $0xd8] sm:$0xff]  ;;  %v32_v62 = vld [vmem:[%s4556_s0 + $0xe0] sm:$0xff] }
  0x37   :  { %v4214_v50 = vpack.c.bf16 %v30_v47, %v29_v46  ;;  %v33_v63 = vld [vmem:[%s4556_s0 + $0xf0] sm:$0xff]  ;;  %v34_v0 = vld [vmem:[%s4556_s0 + $0xf8] sm:$0xff]  ;;  %v35_v14 = vld [vmem:[%s4556_s0 + $0x108] sm:$0xff] }
  0x38   :  { %v4241_v2 = vpack.c.bf16 %v34_v0, %v33_v63  ;;  %v37_v15 = vld [vmem:[%s4556_s0 + $0x120] sm:$0xff]  ;;  %v39_v24 = vld [vmem:[%s4556_s0 + $0x138] sm:$0xff]  ;;  %v43_v42 = vld [vmem:[%s4556_s0 + $0x168] sm:$0xff] }
  0x39   :  { %3174 = vmatmul.mubr.msk.bf16.gmra.mrb[24].mxu1 %vm112_vm2, %v4011_v17  ;;  %v40_v25 = vld [vmem:[%s4556_s0 + $0x140] sm:$0xff]  ;;  %v44_v45 = vld [vmem:[%s4556_s0 + $0x170] sm:$0xff]  ;;  %v2877_v0 = vld [vmem:[%s4556_s0 + $0x198] sm:$0xff] }
  0x3a   :  { %3328 = vmatmul.mubr.msk.bf16.gmra.mrb[8].mxu0 %vm112_vm2, %v4013_v18  ;;  %3177 = vmatprep.mubr.msk.bf16.mxu1 %vm112_vm2, %v4015_v19  ;;  %v4292_v40 = vpack.c.bf16 %v40_v25, %v39_v24  ;;  %v541_v46 = vld [vmem:[%s4556_s0 + $0x2] sm:$0xff]  ;;  %v542_v47 = vld [vmem:[%s4556_s0 + $0xa] sm:$0xff] }
  0x3b   :  { %3331 = vmatprep.mubr.msk.bf16.mxu0 %vm112_vm2, %v4017_v20 }
  0x41   :  { %3178 = vmatmul.mubr.msk.bf16.gmra.mrb[28].mxu1 %vm112_vm2, %v4051_v33 }
  0x42   :  { %3332 = vmatmul.mubr.msk.bf16.gmra.mrb[12].mxu0 %vm112_vm2, %v4053_v34  ;;  %3183 = vmatprep.mubr.msk.bf16.mxu1 %vm112_vm2, %v45_v35  ;;  %v4182_v35 = vpack.c.bf16 %v2827_v27, %v2826_v26  ;;  %v41_v26 = vld [vmem:[%s4556_s0 + $0x150] sm:$0xff]  ;;  %v42_v27 = vld [vmem:[%s4556_s0 + $0x158] sm:$0xff] }
  0x43   :  { %3335 = vmatprep.mubr.msk.bf16.mxu0 %vm112_vm2, %v4055_v39  ;;  %v4294_v41 = vpack.c.bf16 %v42_v27, %v41_v26 }
  0x49   :  { %3184 = vmatmul.mubr.msk.bf16.vlgmr.msra.gmra.mrb[0].mxu1 %vm112_vm2, %v4091_v51 }
  0x4a   :  { %3336 = vmatmul.mubr.msk.bf16.gmra.mrb[16].mxu0 %vm112_vm2, %v4093_v52  ;;  %3216 = vmatpush3.bf16.msra.mxu1 %v3863_v37  ;;  %v22_v37 = vld [vmem:[%s4556_s0 + $0x68] sm:$0xff] }
  0x4b   :  { %3187 = vmatprep.mubr.msk.bf16.mxu1 %vm112_vm2, %v4095_v53  ;;  %3339 = vmatprep.mubr.msk.bf16.mxu0 %vm112_vm2, %v4097_v59  ;;  %v4140_v11 = vpack.c.bf16 %v22_v37, %v21_v1  ;;  %v2977_v1 = vld [vmem:[%s4557_s1 + $0x10] sm:$0x3]  ;;  %v4239_v37 = vpack.c.bf16 %v32_v62, %v31_v61  ;;  %v4316_v61 = vpack.c.bf16 %v44_v45, %v43_v42 }
  0x4c   :  { %3249 = vmatprep.subr.bf16.mxu1 %v4100_v60  ;;  %v4244_v8 = vand.u32 %v2977_v1, %v3773_v7  ;;  %v36_v7 = vld [vmem:[%s4556_s0 + $0x110] sm:$0xff]  ;;  %v573_v62 = vpack.c.bf16 %v542_v47, %v541_v46  ;;  %v2878_v1 = vld [vmem:[%s4556_s0 + $0x1a0] sm:$0xff] }
  0x4d   :  { %v4268_v16 = vpack.c.bf16 %v36_v7, %v35_v14  ;;  %v1766_v14 = vpack.c.bf16 %v2878_v1, %v2877_v0 }
  0x51   :  { %3188 = vmatmul.mubr.msk.bf16.gmra.mrb[4].mxu1 %vm112_vm2, %v4136_v9 }
  0x52   :  { %3340 = vmatmul.mubr.msk.bf16.gmra.mrb[20].mxu0 %vm112_vm2, %v4138_v10  ;;  %3191 = vmatprep.mubr.msk.bf16.mxu1 %vm112_vm2, %v4140_v11 }
  0x53   :  { %3343 = vmatprep.mubr.msk.bf16.mxu0 %vm112_vm2, %v4142_v12 }
  0x59   :  { %3192 = vmatmul.mubr.msk.bf16.gmra.mrb[8].mxu1 %vm112_vm2, %v4176_v28 }
  0x5a   :  { %3344 = vmatmul.mubr.msk.bf16.gmra.mrb[24].mxu0 %vm112_vm2, %v4178_v31  ;;  %3195 = vmatprep.mubr.msk.bf16.mxu1 %vm112_vm2, %v4180_v32 }
  0x5b   :  { %3347 = vmatprep.mubr.msk.bf16.mxu0 %vm112_vm2, %v4182_v35 }
  0x61   :  { %3196 = vmatmul.mubr.msk.bf16.gmra.mrb[12].mxu1 %vm112_vm2, %v4210_v48 }
  0x62   :  { %3348 = vmatmul.mubr.msk.bf16.gmra.mrb[28].mxu0 %vm112_vm2, %v4212_v49  ;;  %3199 = vmatprep.mubr.msk.bf16.mxu1 %vm112_vm2, %v4214_v50 }
  0x63   :  { %3353 = vmatprep.mubr.msk.bf16.mxu0 %vm112_vm2, %v4095_v53 }
  0x69   :  { %3200 = vmatmul.mubr.msk.bf16.gmra.mrb[16].mxu1 %vm112_vm2, %v4239_v37 }
  0x6a   :  { %3354 = vmatmul.mubr.msk.bf16.vlgmr.msra.gmra.mrb[0].mxu0 %vm112_vm2, %v4136_v9  ;;  %3203 = vmatprep.mubr.msk.bf16.mxu1 %vm112_vm2, %v4241_v2 }
  0x6b   :  { %3386 = vmatpush3.bf16.msra.mxu0 %v3936_v58  ;;  %3357 = vmatprep.mubr.msk.bf16.mxu0 %vm112_vm2, %v4140_v11  ;;  %v38_v58 = vld [vmem:[%s4556_s0 + $0x128] sm:$0xff] }
  0x6c   :  { %3419 = vmatprep.subr.bf16.mxu0 %v4244_v8  ;;  %v4270_v23 = vpack.c.bf16 %v38_v58, %v37_v15 }
  0x71   :  { %3204 = vmatmul.mubr.msk.bf16.gmra.mrb[20].mxu1 %vm112_vm2, %v4268_v16 }
  0x72   :  { %3358 = vmatmul.mubr.msk.bf16.gmra.mrb[4].mxu0 %vm112_vm2, %v4176_v28  ;;  %3207 = vmatprep.mubr.msk.bf16.mxu1 %vm112_vm2, %v4270_v23 }
  0x73   :  { %3361 = vmatprep.mubr.msk.bf16.mxu0 %vm112_vm2, %v4180_v32 }
  0x79   :  { %3208 = vmatmul.mubr.msk.bf16.gmra.mrb[24].mxu1 %vm112_vm2, %v4292_v40 }
  0x7a   :  { %3362 = vmatmul.mubr.msk.bf16.gmra.mrb[8].mxu0 %vm112_vm2, %v4210_v48  ;;  %3211 = vmatprep.mubr.msk.bf16.mxu1 %vm112_vm2, %v4294_v41 }
  0x7b   :  { %3365 = vmatprep.mubr.msk.bf16.mxu0 %vm112_vm2, %v4214_v50 }
  0x81   :  { %3212 = vmatmul.mubr.msk.bf16.gmra.mrb[28].mxu1 %vm112_vm2, %v4316_v61 }
  0x82   :  { %3366 = vmatmul.mubr.msk.bf16.gmra.mrb[12].mxu0 %vm112_vm2, %v4239_v37  ;;  %3217 = vmatprep.mubr.msk.bf16.mxu1 %vm112_vm2, %v573_v62 }
  0x83   :  { %3369 = vmatprep.mubr.msk.bf16.mxu0 %vm112_vm2, %v4241_v2 }
  0x89   :  { %3218 = vmatmul.mubr.msk.bf16.vlgmr.msra.gmra.mrb[0].mxu1 %vm112_vm2, %v3890_v44  ;;  %v2875_v44 = vld [vmem:[%s4556_s0 + $0x180] sm:$0xff] }
  0x8a   :  { %3370 = vmatmul.mubr.msk.bf16.gmra.mrb[16].mxu0 %vm112_vm2, %v4268_v16  ;;  %3250 = vmatpush3.bf16.msra.mxu1 %v4100_v60  ;;  %v2876_v60 = vld [vmem:[%s4556_s0 + $0x188] sm:$0xff] }
  0x8b   :  { %3221 = vmatprep.mubr.msk.bf16.mxu1 %vm112_vm2, %v3929_v55  ;;  %3373 = vmatprep.mubr.msk.bf16.mxu0 %vm112_vm2, %v4270_v23  ;;  %v4349_v63 = vpack.c.bf16 %v2876_v60, %v2875_v44 }
  0x8c   :  { %3453 = vmatprep.subr.bf16.mxu1 %v3786_v13 }
  0x91   :  { %3222 = vmatmul.mubr.msk.bf16.gmra.mrb[4].mxu1 %vm112_vm2, %v3933_v57 }
  0x92   :  { %3374 = vmatmul.mubr.msk.bf16.gmra.mrb[20].mxu0 %vm112_vm2, %v4292_v40  ;;  %3225 = vmatprep.mubr.msk.bf16.mxu1 %vm112_vm2, %v3973_v4 }
  0x93   :  { %3377 = vmatprep.mubr.msk.bf16.mxu0 %vm112_vm2, %v4294_v41 }
  0x99   :  { %3226 = vmatmul.mubr.msk.bf16.gmra.mrb[8].mxu1 %vm112_vm2, %v3977_v6 }
  0x9a   :  { %3378 = vmatmul.mubr.msk.bf16.gmra.mrb[24].mxu0 %vm112_vm2, %v4316_v61  ;;  %3229 = vmatprep.mubr.msk.bf16.mxu1 %vm112_vm2, %v4013_v18 }
  0x9b   :  { %3381 = vmatprep.mubr.msk.bf16.mxu0 %vm112_vm2, %v4349_v63 }
  0xa1   :  { %3230 = vmatmul.mubr.msk.bf16.gmra.mrb[12].mxu1 %vm112_vm2, %v4017_v20 }
  0xa2   :  { %3382 = vmatmul.mubr.msk.bf16.gmra.mrb[28].mxu0 %vm112_vm2, %v1766_v14  ;;  %3233 = vmatprep.mubr.msk.bf16.mxu1 %vm112_vm2, %v4053_v34 }
  0xa3   :  { %3387 = vmatprep.mubr.msk.bf16.mxu0 %vm112_vm2, %v3804_v21  ;;  %v2925_v21 = vld [vmem:[%s4556_s0 + $0x189] sm:$0xff] }
  0xa9   :  { %3234 = vmatmul.mubr.msk.bf16.gmra.mrb[16].mxu1 %vm112_vm2, %v4055_v39 }
  0xaa   :  { %3388 = vmatmul.mubr.msk.bf16.vlgmr.msra.gmra.mrb[0].mxu0 %vm112_vm2, %v3808_v22  ;;  %3237 = vmatprep.mubr.msk.bf16.mxu1 %vm112_vm2, %v4093_v52 }
  0xab   :  { %3420 = vmatpush3.bf16.msra.mxu0 %v4244_v8  ;;  %3391 = vmatprep.mubr.msk.bf16.mxu0 %vm112_vm2, %v3833_v29  ;;  %v2926_v29 = vld [vmem:[%s4556_s0 + $0x199] sm:$0xff] }
  0xb1   :  { %3238 = vmatmul.mubr.msk.bf16.gmra.mrb[20].mxu1 %vm112_vm2, %v4097_v59 }
  0xb2   :  { %3392 = vmatmul.mubr.msk.bf16.gmra.mrb[4].mxu0 %vm112_vm2, %v3835_v30  ;;  %3241 = vmatprep.mubr.msk.bf16.mxu1 %vm112_vm2, %v4138_v10  ;;  %v2927_v30 = vld [vmem:[%s4556_s0 + $0x1a1] sm:$0xff] }
  0xb3   :  { %3395 = vmatprep.mubr.msk.bf16.mxu0 %vm112_vm2, %v3860_v36  ;;  %v2060_v36 = vpack.c.bf16 %v2927_v30, %v2926_v29 }
  0xb9   :  { %3242 = vmatmul.mubr.msk.bf16.gmra.mrb[24].mxu1 %vm112_vm2, %v4142_v12 }
  0xba   :  { %3396 = vmatmul.mubr.msk.bf16.gmra.mrb[8].mxu0 %vm112_vm2, %v3865_v38  ;;  %3245 = vmatprep.mubr.msk.bf16.mxu1 %vm112_vm2, %v4178_v31  ;;  %v2975_v38 = vld [vmem:[%s4556_s0 + $0x19a] sm:$0xff] }
  0xbb   :  { %3399 = vmatprep.mubr.msk.bf16.mxu0 %vm112_vm2, %v3888_v43  ;;  %v2976_v43 = vld [vmem:[%s4556_s0 + $0x1a2] sm:$0xff] }
  0xc1   :  { %3246 = vmatmul.mubr.msk.bf16.gmra.mrb[28].mxu1 %vm112_vm2, %v4182_v35 }
  0xc2   :  { %3400 = vmatmul.mubr.msk.bf16.gmra.mrb[12].mxu0 %vm112_vm2, %v3927_v54  ;;  %3251 = vmatprep.mubr.msk.bf16.mxu1 %vm112_vm2, %v4091_v51 }
  0xc3   :  { %3403 = vmatprep.mubr.msk.bf16.mxu0 %vm112_vm2, %v3931_v56 }
  0xc9   :  { %3252 = vmatmul.mubr.msk.bf16.vlgmr.msra.gmra.mrb[0].mxu1 %vm112_vm2, %v4095_v53 }
  0xca   :  { %3404 = vmatmul.mubr.msk.bf16.gmra.mrb[16].mxu0 %vm112_vm2, %v3971_v3  ;;  %3454 = vmatpush3.bf16.msra.mxu1 %v3786_v13  ;;  %v2924_v13 = vld [vmem:[%s4556_s0 + $0x181] sm:$0xff]  ;;  %s3740_s0 = smov [#allocation2]  }
  0xcb   :  { %3255 = vmatprep.mubr.msk.bf16.mxu1 %vm112_vm2, %v4136_v9  ;;  %3407 = vmatprep.mubr.msk.bf16.mxu0 %vm112_vm2, %v3975_v5  ;;  %v2059_v22 = vpack.c.bf16 %v2925_v21, %v2924_v13  ;;  %s2639_s17 = sshll.u32 %s3740_s0, 4  ;;  %s2640_s17 = int_to_ptr.vmem [resolvable:$true] %s2639_s17 }
  0xcc   :  { %s3715_s18 = scalar_lea.vmem %s2640_s17, 4096  ;;  %p3720_p1 = scmp.lt.s32.totalorder %s2640_s17, %s2640_s17 }
  0xcd   :  { %p3716_p0 = scmp.ne.s32.totalorder %s2640_s17, %s3715_s18  ;;  %p3721_p2 = scmp.lt.s32.totalorder %s3715_s18, %s3715_s18 }
  0xcf   :  { %p3722_p3 = por %p3721_p2, %p3720_p1 }
  0xd1   :  { %3256 = vmatmul.mubr.msk.bf16.gmra.mrb[4].mxu1 %vm112_vm2, %v4140_v11  ;;  %p3723_p4 = pnand %p3722_p3, %p3716_p0 }
  0xd2   :  { %3408 = vmatmul.mubr.msk.bf16.gmra.mrb[20].mxu0 %vm112_vm2, %v4011_v17  ;;  %3259 = vmatprep.mubr.msk.bf16.mxu1 %vm112_vm2, %v4176_v28 }
  0xd3   :  { %3411 = vmatprep.mubr.msk.bf16.mxu0 %vm112_vm2, %v4015_v19 }
  0xd9   :  { %3260 = vmatmul.mubr.msk.bf16.gmra.mrb[8].mxu1 %vm112_vm2, %v4180_v32 }
  0xda   :  { %3412 = vmatmul.mubr.msk.bf16.gmra.mrb[24].mxu0 %vm112_vm2, %v4051_v33  ;;  %3263 = vmatprep.mubr.msk.bf16.mxu1 %vm112_vm2, %v4210_v48 }
  0xdb   :  { %3415 = vmatprep.mubr.msk.bf16.mxu0 %vm112_vm2, %v2059_v22 }
  0xe1   :  { %3264 = vmatmul.mubr.msk.bf16.gmra.mrb[12].mxu1 %vm112_vm2, %v4214_v50 }
  0xe2   :  { %3416 = vmatmul.mubr.msk.bf16.gmra.mrb[28].mxu0 %vm112_vm2, %v2060_v36  ;;  %3267 = vmatprep.mubr.msk.bf16.mxu1 %vm112_vm2, %v4239_v37 }
  0xe3   :  { %3421 = vmatprep.mubr.msk.bf16.mxu0 %vm112_vm2, %v3929_v55 }
  0xe9   :  { %3268 = vmatmul.mubr.msk.bf16.gmra.mrb[16].mxu1 %vm112_vm2, %v4241_v2 }
  0xea   :  { %3422 = vmatmul.mubr.msk.bf16.vlgmr.msra.gmra.mrb[0].mxu0 %vm112_vm2, %v3933_v57  ;;  %3271 = vmatprep.mubr.msk.bf16.mxu1 %vm112_vm2, %v4268_v16 }
  0xeb   :  { %3425 = vmatprep.mubr.msk.bf16.mxu0 %vm112_vm2, %v3973_v4 }
  0xf1   :  { %3272 = vmatmul.mubr.msk.bf16.gmra.mrb[20].mxu1 %vm112_vm2, %v4270_v23 }
  0xf2   :  { %3426 = vmatmul.mubr.msk.bf16.gmra.mrb[4].mxu0 %vm112_vm2, %v3977_v6  ;;  %3275 = vmatprep.mubr.msk.bf16.mxu1 %vm112_vm2, %v4292_v40 }
  0xf3   :  { %3429 = vmatprep.mubr.msk.bf16.mxu0 %vm112_vm2, %v4013_v18 }
  0xf9   :  { %3276 = vmatmul.mubr.msk.bf16.gmra.mrb[24].mxu1 %vm112_vm2, %v4294_v41 }
  0xfa   :  { %3430 = vmatmul.mubr.msk.bf16.gmra.mrb[8].mxu0 %vm112_vm2, %v4017_v20  ;;  %3279 = vmatprep.mubr.msk.bf16.mxu1 %vm112_vm2, %v4316_v61 }
  0xfb   :  { %3433 = vmatprep.mubr.msk.bf16.mxu0 %vm112_vm2, %v4053_v34 }
 0x101   :  { %3280 = vmatmul.mubr.msk.bf16.gmra.mrb[28].mxu1 %vm112_vm2, %v4349_v63 }
 0x102   :  { %3434 = vmatmul.mubr.msk.bf16.gmra.mrb[12].mxu0 %vm112_vm2, %v4055_v39  ;;  %3301 = vmatprep.mubr.msk.bf16.mxu1 %vm112_vm2, %v3927_v54  ;;  %v2354_v54 = vpack.c.bf16 %v2976_v43, %v2975_v38 }
 0x103   :  { %3437 = vmatprep.mubr.msk.bf16.mxu0 %vm112_vm2, %v4093_v52 }
 0x109   :  { %3302 = vmatmul.mubr.msk.bf16.vlgmr.msra.gmra.mrb[16].mxu1 %vm112_vm2, %v3931_v56 }
 0x10a   :  { %3438 = vmatmul.mubr.msk.bf16.gmra.mrb[16].mxu0 %vm112_vm2, %v4097_v59  ;;  %3305 = vmatprep.mubr.msk.bf16.mxu1 %vm112_vm2, %v3971_v3 }
 0x10b   :  { %3441 = vmatprep.mubr.msk.bf16.mxu0 %vm112_vm2, %v4138_v10 }
 0x111   :  { %3306 = vmatmul.mubr.msk.bf16.gmra.mrb[20].mxu1 %vm112_vm2, %v3975_v5 }
 0x112   :  { %3442 = vmatmul.mubr.msk.bf16.gmra.mrb[20].mxu0 %vm112_vm2, %v4142_v12  ;;  %3309 = vmatprep.mubr.msk.bf16.mxu1 %vm112_vm2, %v4011_v17 }
 0x113   :  { %3445 = vmatprep.mubr.msk.bf16.mxu0 %vm112_vm2, %v4178_v31 }
 0x119   :  { %3310 = vmatmul.mubr.msk.bf16.gmra.mrb[24].mxu1 %vm112_vm2, %v4015_v19 }
 0x11a   :  { %3446 = vmatmul.mubr.msk.bf16.gmra.mrb[24].mxu0 %vm112_vm2, %v4182_v35  ;;  %3313 = vmatprep.mubr.msk.bf16.mxu1 %vm112_vm2, %v4051_v33 }
 0x11b   :  { %3449 = vmatprep.mubr.msk.bf16.mxu0 %vm112_vm2, %v4212_v49 }
 0x121   :  { %3314 = vmatmul.mubr.msk.bf16.gmra.mrb[28].mxu1 %vm112_vm2, %v2059_v22 }
 0x122   :  { %3450 = vmatmul.mubr.msk.bf16.gmra.mrb[28].mxu0 %vm112_vm2, %v2354_v54 }
 0x19c   :  { %v3253_v55 = vpop.f32.mrb[0].mxu1 }
 0x19d   :  { %v971_v56 = vpop.f32.mrb[1].mxu1 }
 0x19e   :  { %v3254_v57 = vpop.f32.mrb[2].mxu1 }
 0x19f   :  { %v974_v3 = vpop.f32.mrb[3].mxu1 }
 0x1a4   :  { %v3257_v4 = vpop.f32.mrb[4].mxu1 }
 0x1a5   :  { %v987_v5 = vpop.f32.mrb[5].mxu1 }
 0x1a6   :  { %v3258_v6 = vpop.f32.mrb[6].mxu1 }
 0x1a7   :  { %v990_v17 = vpop.f32.mrb[7].mxu1 }
 0x1ac   :  { %v3261_v18 = vpop.f32.mrb[8].mxu1 }
 0x1ad   :  { %v1003_v19 = vpop.f32.mrb[9].mxu1 }
 0x1ae   :  { %v3262_v20 = vpop.f32.mrb[10].mxu1 }
 0x1af   :  { %v1006_v33 = vpop.f32.mrb[11].mxu1 }
 0x1b4   :  { %v3265_v34 = vpop.f32.mrb[12].mxu1 }
 0x1b5   :  { %v1019_v39 = vpop.f32.mrb[13].mxu1 }
 0x1b6   :  { %v3266_v51 = vpop.f32.mrb[14].mxu1 }
 0x1b7   :  { %v1022_v52 = vpop.f32.mrb[15].mxu1 }
 0x1bd   :  { %v3423_v53 = vpop.f32.mrb[0].mxu0 }
 0x1be   :  { %v3455_v59 = vadd.f32 %v3423_v53, %v3253_v55  ;;  %v2442_v9 = vpop.f32.mrb[1].mxu0 }
 0x1bf   :  { %v3456_v10 = vadd.f32 %v2442_v9, %v971_v56  ;;  %v3424_v11 = vpop.f32.mrb[2].mxu0 }
 0x1c0   :  { %2604 = vst.msk [vmem:[#allocation2 + $0x10] sm:$0xff] %vm2601_vm3, %v3455_v59  ;;  %v3457_v12 = vadd.f32 %v3424_v11, %v3254_v57  ;;  %v2445_v28 = vpop.f32.mrb[3].mxu0 }
 0x1c1   :  { %2602 = vst.msk [vmem:[#allocation2] sm:$0xff] %vm2601_vm3, %v3456_v10  ;;  %v3458_v31 = vadd.f32 %v2445_v28, %v974_v3 }
 0x1c2   :  { %2605 = vst.msk [vmem:[#allocation2 + $0x18] sm:$0xff] %vm2601_vm3, %v3457_v12 }
 0x1c3   :  { %2603 = vst.msk [vmem:[#allocation2 + $0x8] sm:$0xff] %vm2601_vm3, %v3458_v31 }
 0x1c5   :  { %v3427_v32 = vpop.f32.mrb[4].mxu0 }
 0x1c6   :  { %v3459_v35 = vadd.f32 %v3427_v32, %v3257_v4  ;;  %v2458_v48 = vpop.f32.mrb[5].mxu0 }
 0x1c7   :  { %v3460_v49 = vadd.f32 %v2458_v48, %v987_v5  ;;  %v3428_v50 = vpop.f32.mrb[6].mxu0 }
 0x1c8   :  { %2608 = vst.msk [vmem:[#allocation2 + $0x30] sm:$0xff] %vm2601_vm3, %v3459_v35  ;;  %v3461_v37 = vadd.f32 %v3428_v50, %v3258_v6  ;;  %v2461_v2 = vpop.f32.mrb[7].mxu0 }
 0x1c9   :  { %2606 = vst.msk [vmem:[#allocation2 + $0x20] sm:$0xff] %vm2601_vm3, %v3460_v49  ;;  %v3462_v8 = vadd.f32 %v2461_v2, %v990_v17 }
 0x1ca   :  { %2609 = vst.msk [vmem:[#allocation2 + $0x38] sm:$0xff] %vm2601_vm3, %v3461_v37 }
 0x1cb   :  { %2607 = vst.msk [vmem:[#allocation2 + $0x28] sm:$0xff] %vm2601_vm3, %v3462_v8 }
 0x1cd   :  { %v3431_v7 = vpop.f32.mrb[8].mxu0 }
 0x1ce   :  { %v3463_v15 = vadd.f32 %v3431_v7, %v3261_v18  ;;  %v2474_v58 = vpop.f32.mrb[9].mxu0 }
 0x1cf   :  { %v3464_v16 = vadd.f32 %v2474_v58, %v1003_v19  ;;  %v3432_v23 = vpop.f32.mrb[10].mxu0 }
 0x1d0   :  { %2612 = vst.msk [vmem:[#allocation2 + $0x50] sm:$0xff] %vm2601_vm3, %v3463_v15  ;;  %v3465_v24 = vadd.f32 %v3432_v23, %v3262_v20  ;;  %v2477_v25 = vpop.f32.mrb[11].mxu0 }
 0x1d1   :  { %2610 = vst.msk [vmem:[#allocation2 + $0x40] sm:$0xff] %vm2601_vm3, %v3464_v16  ;;  %v3466_v26 = vadd.f32 %v2477_v25, %v1006_v33 }
 0x1d2   :  { %2613 = vst.msk [vmem:[#allocation2 + $0x58] sm:$0xff] %vm2601_vm3, %v3465_v24 }
 0x1d3   :  { %2611 = vst.msk [vmem:[#allocation2 + $0x48] sm:$0xff] %vm2601_vm3, %v3466_v26 }
 0x1d5   :  { %v3435_v27 = vpop.f32.mrb[12].mxu0 }
 0x1d6   :  { %v3467_v40 = vadd.f32 %v3435_v27, %v3265_v34  ;;  %v2490_v41 = vpop.f32.mrb[13].mxu0 }
 0x1d7   :  { %v3468_v42 = vadd.f32 %v2490_v41, %v1019_v39  ;;  %v3436_v45 = vpop.f32.mrb[14].mxu0 }
 0x1d8   :  { %2616 = vst.msk [vmem:[#allocation2 + $0x70] sm:$0xff] %vm2601_vm3, %v3467_v40  ;;  %v3469_v46 = vadd.f32 %v3436_v45, %v3266_v51  ;;  %v2493_v47 = vpop.f32.mrb[15].mxu0 }
 0x1d9   :  { %2614 = vst.msk [vmem:[#allocation2 + $0x60] sm:$0xff] %vm2601_vm3, %v3468_v42  ;;  %v3470_v61 = vadd.f32 %v2493_v47, %v1022_v52 }
 0x1da   :  { %2617 = vst.msk [vmem:[#allocation2 + $0x78] sm:$0xff] %vm2601_vm3, %v3469_v46 }
 0x1db   :  { %2615 = vst.msk [vmem:[#allocation2 + $0x68] sm:$0xff] %vm2601_vm3, %v3470_v61 }
 0x1dc   :  { %v3303_v62 = vpop.f32.mrb[16].mxu1 }
 0x1dd   :  { %v3439_v44 = vpop.f32.mrb[16].mxu0  ;;  %v1329_v63 = vpop.f32.mrb[17].mxu1 }
 0x1de   :  { %v3471_v60 = vadd.f32 %v3439_v44, %v3303_v62  ;;  %v2506_v0 = vpop.f32.mrb[17].mxu0  ;;  %v3304_v14 = vpop.f32.mrb[18].mxu1 }
 0x1df   :  { %v3472_v1 = vadd.f32 %v2506_v0, %v1329_v63  ;;  %v3440_v13 = vpop.f32.mrb[18].mxu0  ;;  %v1332_v22 = vpop.f32.mrb[19].mxu1 }
 0x1e0   :  { %2620 = vst.msk [vmem:[#allocation2 + $0x90] sm:$0xff] %vm2601_vm3, %v3471_v60  ;;  %v3473_v21 = vadd.f32 %v3440_v13, %v3304_v14  ;;  %v2509_v29 = vpop.f32.mrb[19].mxu0 }
 0x1e1   :  { %2618 = vst.msk [vmem:[#allocation2 + $0x80] sm:$0xff] %vm2601_vm3, %v3472_v1  ;;  %v3474_v30 = vadd.f32 %v2509_v29, %v1332_v22 }
 0x1e2   :  { %2621 = vst.msk [vmem:[#allocation2 + $0x98] sm:$0xff] %vm2601_vm3, %v3473_v21 }
 0x1e3   :  { %2619 = vst.msk [vmem:[#allocation2 + $0x88] sm:$0xff] %vm2601_vm3, %v3474_v30 }
 0x1e4   :  { %v3307_v36 = vpop.f32.mrb[20].mxu1 }
 0x1e5   :  { %v3443_v38 = vpop.f32.mrb[20].mxu0  ;;  %v1345_v54 = vpop.f32.mrb[21].mxu1 }
 0x1e6   :  { %v3475_v43 = vadd.f32 %v3443_v38, %v3307_v36  ;;  %v2522_v55 = vpop.f32.mrb[21].mxu0  ;;  %v3308_v57 = vpop.f32.mrb[22].mxu1 }
 0x1e7   :  { %v3476_v56 = vadd.f32 %v2522_v55, %v1345_v54  ;;  %v3444_v3 = vpop.f32.mrb[22].mxu0  ;;  %v1348_v5 = vpop.f32.mrb[23].mxu1 }
 0x1e8   :  { %2624 = vst.msk [vmem:[#allocation2 + $0xb0] sm:$0xff] %vm2601_vm3, %v3475_v43  ;;  %v3477_v4 = vadd.f32 %v3444_v3, %v3308_v57  ;;  %v2525_v6 = vpop.f32.mrb[23].mxu0 }
 0x1e9   :  { %2622 = vst.msk [vmem:[#allocation2 + $0xa0] sm:$0xff] %vm2601_vm3, %v3476_v56  ;;  %v3478_v17 = vadd.f32 %v2525_v6, %v1348_v5 }
 0x1ea   :  { %2625 = vst.msk [vmem:[#allocation2 + $0xb8] sm:$0xff] %vm2601_vm3, %v3477_v4 }
 0x1eb   :  { %2623 = vst.msk [vmem:[#allocation2 + $0xa8] sm:$0xff] %vm2601_vm3, %v3478_v17 }
 0x1ec   :  { %v3311_v18 = vpop.f32.mrb[24].mxu1 }
 0x1ed   :  { %v3447_v19 = vpop.f32.mrb[24].mxu0  ;;  %v1361_v33 = vpop.f32.mrb[25].mxu1 }
 0x1ee   :  { %v3479_v20 = vadd.f32 %v3447_v19, %v3311_v18  ;;  %v2538_v34 = vpop.f32.mrb[25].mxu0  ;;  %v3312_v51 = vpop.f32.mrb[26].mxu1 }
 0x1ef   :  { %v3480_v39 = vadd.f32 %v2538_v34, %v1361_v33  ;;  %v3448_v52 = vpop.f32.mrb[26].mxu0  ;;  %v1364_v59 = vpop.f32.mrb[27].mxu1 }
 0x1f0   :  { %2628 = vst.msk [vmem:[#allocation2 + $0xd0] sm:$0xff] %vm2601_vm3, %v3479_v20  ;;  %v3481_v53 = vadd.f32 %v3448_v52, %v3312_v51  ;;  %v2541_v9 = vpop.f32.mrb[27].mxu0 }
 0x1f1   :  { %2626 = vst.msk [vmem:[#allocation2 + $0xc0] sm:$0xff] %vm2601_vm3, %v3480_v39  ;;  %v3482_v10 = vadd.f32 %v2541_v9, %v1364_v59 }
 0x1f2   :  { %2629 = vst.msk [vmem:[#allocation2 + $0xd8] sm:$0xff] %vm2601_vm3, %v3481_v53 }
 0x1f3   :  { %2627 = vst.msk [vmem:[#allocation2 + $0xc8] sm:$0xff] %vm2601_vm3, %v3482_v10 }
 0x1f4   :  { %v3315_v11 = vpop.f32.mrb[28].mxu1 }
 0x1f5   :  { %v3451_v12 = vpop.f32.mrb[28].mxu0  ;;  %v1377_v31 = vpop.f32.mrb[29].mxu1 }
 0x1f6   :  { %v3483_v28 = vadd.f32 %v3451_v12, %v3315_v11  ;;  %v2554_v32 = vpop.f32.mrb[29].mxu0  ;;  %v3316_v48 = vpop.f32.mrb[30].mxu1 }
 0x1f7   :  { %v3484_v35 = vadd.f32 %v2554_v32, %v1377_v31  ;;  %v3452_v49 = vpop.f32.mrb[30].mxu0  ;;  %v1380_v37 = vpop.f32.mrb[31].mxu1 }
 0x1f8   :  { %2632 = vst.msk [vmem:[#allocation2 + $0xf0] sm:$0xff] %vm2601_vm3, %v3483_v28  ;;  %v3485_v50 = vadd.f32 %v3452_v49, %v3316_v48  ;;  %v2557_v2 = vpop.f32.mrb[31].mxu0 }
 0x1f9   :  { %2630 = vst.msk [vmem:[#allocation2 + $0xe0] sm:$0xff] %vm2601_vm3, %v3484_v35  ;;  %v3486_v8 = vadd.f32 %v2557_v2, %v1380_v37 }
 0x1fa   :  { %2633 = vst.msk [vmem:[#allocation2 + $0xf8] sm:$0xff] %vm2601_vm3, %v3485_v50 }
 0x1fb   :  { %2631 = vst.msk [vmem:[#allocation2 + $0xe8] sm:$0xff] %vm2601_vm3, %v3486_v8 }
 0x1fc   :  { %3726 = shalt.err (!%p3723_p4)
}
 0x1fd   :  { %s3727_s21 = scalar_lea.hbm %s4558_s2, 4096 }
 0x1fe   :  { %p3728_p5 = scmp.ne.s32.totalorder %s4558_s2, %s3727_s21  ;;  %p3731_p6 = scmp.lt.u32.totalorder %s3727_s21, %s4558_s2 }
 0x200   :  { %p3733_p7 = pnand %p3731_p6, %p3728_p5 }
 0x202   :  { %3736 = shalt.err (!%p3733_p7)
}
 0x203   :  { %s3741_s26 = smov 128   ;;  %s3742_s27 = smov 8  }
 0x204   :  { %2645 = dma.vmem_to_hbm [thread:$0]  %s2640_s17, 4096, %s4558_s2, [#allocation3], %s3741_s26, %s3741_s26, %s3742_s27  }
 0x205   :  { %3737 = dma.done.wait [#allocation3], 4096  }
 0x206   :  { %3738 = vsyncadd [#allocation3], 4294963200 }
 0x207   :  { %2649 = vsyncpa [#allocation3], 1 }

</bundles_post_ra>
